<compile_context>
chip_gen: v7x
topology: tpu7x:2x2x1
jax: 0.10.0
libtpu: 0.0.40
codegen_flags: <defaults>
</compile_context>

<pallas_src>
import math

import jax
import jax.numpy as jnp
import numpy as np
from jax.experimental import pallas as pl
from jax.experimental.pallas import tpu as pltpu  # noqa: F401  (TPU backend)

D_MODEL = 32
NHEAD = 4
DIM_FF = 64
NUM_LAYERS = 2
LN_EPS = 1e-5


# ----------------------------------------------------------------------------
# Fused Pallas kernel: whole decoder stack in one call (everything in VMEM)
# ----------------------------------------------------------------------------
def ru_decoder_kernel(x_ref,
                      wqkv_ref, bqkv_ref, wo_ref, bo_ref,
                      w1_ref, b1_ref, w2_ref, b2_ref,
                      ln1g_ref, ln1b_ref, ln2g_ref, ln2b_ref,
                      lnfg_ref, lnfb_ref,
                      out_ref, rel_ref):
    N, D = x_ref.shape                 # N = B * T rows, row index = b*T + t
    L, B, T, _ = rel_ref.shape
    hd = D // NHEAD
    # contract dim 1 of both operands (== A @ B.T without a transpose)
    cdim = (((1,), (1,)), ((), ()))

    x = x_ref[...].astype(jnp.float32)          # (N, D) activation slab

    def layer_norm(z, g, b):
        mu = jnp.mean(z, axis=-1, keepdims=True)
        var = jnp.mean(jnp.square(z - mu), axis=-1, keepdims=True)
        return (z - mu) * jax.lax.rsqrt(var + LN_EPS) * g + b

    for l in range(L):                          # static loop over layers (L=2)
        # ---- packed QKV projection: one matmul over the whole slab.
        #      1/sqrt(hd) is already folded into the Q columns of wqkv/bqkv.
        qkv = jnp.dot(x, wqkv_ref[l],
                      preferred_element_type=jnp.float32) + bqkv_ref[l]   # (N, 3D)

        att_blocks = []
        for b in range(B):                      # per contiguous batch block
            # static, sublane-aligned slice (T = 8 rows) -> no mask needed
            blk = qkv[b * T:(b + 1) * T, :]                               # (T, 3D)
            p_sum = jnp.zeros((T, T), jnp.float32)
            heads = []
            for h in range(NHEAD):              # static loop over heads
                lo = h * hd
                qh = blk[:, lo:lo + hd]                                   # (T, hd)
                kh = blk[:, D + lo:D + lo + hd]                           # (T, hd)
                vh = blk[:, 2 * D + lo:2 * D + lo + hd]                   # (T, hd)

                s = jax.lax.dot_general(qh, kh, cdim,
                                        preferred_element_type=jnp.float32)  # (T, T)
                s = s - jnp.max(s, axis=-1, keepdims=True)
                e = jnp.exp(s)
                # exact normalization: these rows are also returned as maps
                p = e / jnp.sum(e, axis=-1, keepdims=True)
                p_sum = p_sum + p
                heads.append(jnp.dot(p, vh, preferred_element_type=jnp.float32))

            # lane-pack the NHEAD head outputs into one (T, D) tile
            att_blocks.append(jnp.concatenate(heads, axis=-1))
            # relationship map: head-averaged attention, contiguous write
            rel_ref[l, b] = p_sum * (1.0 / NHEAD)

        att = jnp.concatenate(att_blocks, axis=0)                         # (N, D)
        # single full-width output projection (replaces 4 K=8 matmuls + adds)
        sa = jnp.dot(att, wo_ref[l], preferred_element_type=jnp.float32) + bo_ref[l]

        # ---- residual + LN1 ----
        x = layer_norm(x + sa, ln1g_ref[l], ln1b_ref[l])

        # ---- FFN + residual + LN2 ----
        h1 = jnp.dot(x, w1_ref[l], preferred_element_type=jnp.float32) + b1_ref[l]
        h1 = jnp.maximum(h1, 0.0)
        ff = jnp.dot(h1, w2_ref[l], preferred_element_type=jnp.float32) + b2_ref[l]
        x = layer_norm(x + ff, ln2g_ref[l], ln2b_ref[l])

    # optional final norm of the decoder stack
    x = layer_norm(x, lnfg_ref[...], lnfb_ref[...])
    out_ref[...] = x.astype(out_ref.dtype)


# ----------------------------------------------------------------------------
# One-time parameter transform (NOT per call): fold 1/sqrt(head_dim) into the
# Q columns of the packed QKV projection (weights and bias).
# ----------------------------------------------------------------------------
def prepare_params(params):
    hd = D_MODEL // NHEAD
    scale = np.ones((3 * D_MODEL,), np.float32)
    scale[:D_MODEL] = 1.0 / math.sqrt(hd)
    p = dict(params)
    p["wqkv"] = params["wqkv"] * scale[None, None, :]
    p["bqkv"] = params["bqkv"] * scale[None, None, :]
    return p


# ----------------------------------------------------------------------------
# Wrapper: one tiny boundary transpose (b*T+t row folding), one pallas_call
# ----------------------------------------------------------------------------
def ru_decoder(src, params):
    """src: (T, B, D_MODEL); params already passed through prepare_params.
    Returns (output (T, B, D), rel_maps (L, B, T, T))."""
    T, B, D = src.shape
    L = params["wqkv"].shape[0]
    N = B * T

    # fold rows as b*T + t so each batch is a contiguous block in the kernel
    x2d = jnp.transpose(src, (1, 0, 2)).reshape(N, D)

    out2d, rel = pl.pallas_call(
        ru_decoder_kernel,
        out_shape=(jax.ShapeDtypeStruct((N, D), src.dtype),
                   jax.ShapeDtypeStruct((L, B, T, T), jnp.float32)),
    )(x2d,
      params["wqkv"], params["bqkv"], params["wo"], params["bo"],
      params["w1"], params["b1"], params["w2"], params["b2"],
      params["ln1_g"], params["ln1_b"], params["ln2_g"], params["ln2_b"],
      params["lnf_g"], params["lnf_b"])

    out = jnp.transpose(out2d.reshape(B, T, D), (1, 0, 2))
    return out, rel


# ----------------------------------------------------------------------------
# Deterministic parameter init + pure-JAX reference
# ----------------------------------------------------------------------------
def init_params(key, num_layers=NUM_LAYERS):
    D, F, L = D_MODEL, DIM_FF, num_layers
    ks = jax.random.split(key, 12)

    def n(k, shape, scale=0.05):
        return scale * jax.random.normal(k, shape, jnp.float32)

    return {
        # weights stored pre-transposed (D_in, D_out) so kernels do x @ W
        "wqkv": n(ks[0], (L, D, 3 * D)),
        "bqkv": n(ks[1], (L, 1, 3 * D), 0.02),
        "wo":   n(ks[2], (L, D, D)),
        "bo":   n(ks[3], (L, 1, D), 0.02),
        "w1":   n(ks[4], (L, D, F)),
        "b1":   n(ks[5], (L, 1, F), 0.02),
        "w2":   n(ks[6], (L, F, D)),
        "b2":   n(ks[7], (L, 1, D), 0.02),
        "ln1_g": 1.0 + n(ks[8], (L, 1, D), 0.1),
        "ln1_b": n(ks[9], (L, 1, D), 0.1),
        "ln2_g": 1.0 + n(ks[10], (L, 1, D), 0.1),
        "ln2_b": n(ks[11], (L, 1, D), 0.1),
        "lnf_g": jnp.ones((1, D), jnp.float32),
        "lnf_b": jnp.zeros((1, D), jnp.float32),
    }


def _ref_ln(z, g, b):
    mu = jnp.mean(z, axis=-1, keepdims=True)
    var = jnp.mean(jnp.square(z - mu), axis=-1, keepdims=True)
    return (z - mu) * jax.lax.rsqrt(var + LN_EPS) * g + b


def reference(src, params):
    T, B, D = src.shape
    L = params["wqkv"].shape[0]
    hd = D // NHEAD
    x = jnp.transpose(src, (1, 0, 2)).astype(jnp.float32)   # (B, T, D)
    maps = []
    for l in range(L):
        qkv = x @ params["wqkv"][l] + params["bqkv"][l]
        q, k, v = qkv[..., :D], qkv[..., D:2 * D], qkv[..., 2 * D:]
        qh = q.reshape(B, T, NHEAD, hd).transpose(0, 2, 1, 3) / math.sqrt(hd)
        kh = k.reshape(B, T, NHEAD, hd).transpose(0, 2, 1, 3)
        vh = v.reshape(B, T, NHEAD, hd).transpose(0, 2, 1, 3)
        s = jnp.einsum("bhqd,bhkd->bhqk", qh, kh)
        p = jax.nn.softmax(s, axis=-1)
        maps.append(jnp.mean(p, axis=1))                    # (B, T, T)
        att = jnp.einsum("bhqk,bhkd->bhqd", p, vh)
        att = att.transpose(0, 2, 1, 3).reshape(B, T, D)
        sa = att @ params["wo"][l] + params["bo"][l]
        x = _ref_ln(x + sa, params["ln1_g"][l], params["ln1_b"][l])
        h1 = jnp.maximum(x @ params["w1"][l] + params["b1"][l], 0.0)
        ff = h1 @ params["w2"][l] + params["b2"][l]
        x = _ref_ln(x + ff, params["ln2_g"][l], params["ln2_b"][l])
    x = _ref_ln(x, params["lnf_g"], params["lnf_b"])
    return jnp.transpose(x, (1, 0, 2)), jnp.stack(maps, axis=0)


# ----------------------------------------------------------------------------
# Main
# ----------------------------------------------------------------------------
if __name__ == "__main__":
    key = jax.random.PRNGKey(0)
    k_src, k_par = jax.random.split(key)

    T, B = 8, 2
    src = jax.random.normal(k_src, (T, B, D_MODEL), jnp.float32)
    params = init_params(k_par)
    kernel_params = prepare_params(params)      # one-time weight transform

    out, rel = jax.jit(ru_decoder)(src, kernel_params)
    out = jax.block_until_ready(out)
    rel = jax.block_until_ready(rel)

    ref_out, ref_rel = reference(src, params)
    np.testing.assert_allclose(np.asarray(out), np.asarray(ref_out),
                               rtol=5e-3, atol=5e-3)
    np.testing.assert_allclose(np.asarray(rel), np.asarray(ref_rel),
                               rtol=5e-3, atol=5e-3)

    print("KERNEL_OK")
</pallas_src>

<mosaic_0001>
module attributes {stable_mosaic.version = 11 : i64} {
  func.func @ru_decoder_kernel(%arg0: memref<16x32xf32, #tpu.memory_space<vmem>>, %arg1: memref<2x32x96xf32, #tpu.memory_space<vmem>>, %arg2: memref<2x1x96xf32, #tpu.memory_space<vmem>>, %arg3: memref<2x32x32xf32, #tpu.memory_space<vmem>>, %arg4: memref<2x1x32xf32, #tpu.memory_space<vmem>>, %arg5: memref<2x32x64xf32, #tpu.memory_space<vmem>>, %arg6: memref<2x1x64xf32, #tpu.memory_space<vmem>>, %arg7: memref<2x64x32xf32, #tpu.memory_space<vmem>>, %arg8: memref<2x1x32xf32, #tpu.memory_space<vmem>>, %arg9: memref<2x1x32xf32, #tpu.memory_space<vmem>>, %arg10: memref<2x1x32xf32, #tpu.memory_space<vmem>>, %arg11: memref<2x1x32xf32, #tpu.memory_space<vmem>>, %arg12: memref<2x1x32xf32, #tpu.memory_space<vmem>>, %arg13: memref<1x32xf32, #tpu.memory_space<vmem>>, %arg14: memref<1x32xf32, #tpu.memory_space<vmem>>, %arg15: memref<16x32xf32, #tpu.memory_space<vmem>>, %arg16: memref<2x2x8x8xf32, #tpu.memory_space<vmem>>) attributes {dimension_semantics = [], scalar_prefetch = 0 : i64, scratch_operands = 0 : i64, tpu.core_type = #tpu.core_type<tc>} {
    %c0 = arith.constant 0 : index
    %c0_0 = arith.constant 0 : index
    %0 = vector.load %arg0[%c0, %c0_0] : memref<16x32xf32, #tpu.memory_space<vmem>>, vector<16x32xf32>
    %c0_1 = arith.constant 0 : index
    %c0_2 = arith.constant 0 : index
    %c0_3 = arith.constant 0 : index
    %1 = vector.load %arg1[%c0_1, %c0_2, %c0_3] : memref<2x32x96xf32, #tpu.memory_space<vmem>>, vector<1x32x96xf32>
    %2 = vector.shape_cast %1 : vector<1x32x96xf32> to vector<32x96xf32>
    %cst = arith.constant dense<0.000000e+00> : vector<16x96xf32>
    %3 = tpu.matmul %0, %2, %cst {dimension_numbers = #tpu.dot_dimension_numbers<[1], [0], [0], [1], [0, 0, 1, 1], [], []>} : vector<16x32xf32>, vector<32x96xf32>, vector<16x96xf32> -> vector<16x96xf32>
    %c0_4 = arith.constant 0 : index
    %c0_5 = arith.constant 0 : index
    %c0_6 = arith.constant 0 : index
    %4 = vector.load %arg2[%c0_4, %c0_5, %c0_6] : memref<2x1x96xf32, #tpu.memory_space<vmem>>, vector<1x1x96xf32>
    %5 = vector.shape_cast %4 : vector<1x1x96xf32> to vector<1x96xf32>
    %6 = vector.broadcast %5 : vector<1x96xf32> to vector<16x96xf32>
    %7 = arith.addf %3, %6 : vector<16x96xf32>
    %8 = vector.extract_strided_slice %7 {offsets = [0, 0], sizes = [8, 96], strides = [1, 1]} : vector<16x96xf32> to vector<8x96xf32>
    %cst_7 = arith.constant 0.000000e+00 : f32
    %9 = vector.broadcast %cst_7 : f32 to vector<8x8xf32>
    %10 = vector.extract_strided_slice %8 {offsets = [0, 0], sizes = [8, 8], strides = [1, 1]} : vector<8x96xf32> to vector<8x8xf32>
    %11 = vector.extract_strided_slice %8 {offsets = [0, 32], sizes = [8, 8], strides = [1, 1]} : vector<8x96xf32> to vector<8x8xf32>
    %12 = vector.extract_strided_slice %8 {offsets = [0, 64], sizes = [8, 8], strides = [1, 1]} : vector<8x96xf32> to vector<8x8xf32>
    %cst_8 = arith.constant dense<0.000000e+00> : vector<8x8xf32>
    %13 = tpu.matmul %10, %11, %cst_8 {dimension_numbers = #tpu.dot_dimension_numbers<[1], [1], [0], [0], [0, 0, 1, 0], [], []>} : vector<8x8xf32>, vector<8x8xf32>, vector<8x8xf32> -> vector<8x8xf32>
    %cst_9 = arith.constant dense<0xFF800000> : vector<8xf32>
    %14 = vector.multi_reduction <maximumf>, %13, %cst_9 [1] : vector<8x8xf32> to vector<8xf32>
    %15 = vector.shape_cast %14 : vector<8xf32> to vector<8x1xf32>
    %16 = vector.broadcast %15 : vector<8x1xf32> to vector<8x8xf32>
    %17 = arith.subf %13, %16 : vector<8x8xf32>
    %18 = math.exp %17 : vector<8x8xf32>
    %cst_10 = arith.constant dense<0.000000e+00> : vector<8xf32>
    %19 = vector.multi_reduction <add>, %18, %cst_10 [1] : vector<8x8xf32> to vector<8xf32>
    %20 = vector.shape_cast %19 : vector<8xf32> to vector<8x1xf32>
    %21 = vector.broadcast %20 : vector<8x1xf32> to vector<8x8xf32>
    %22 = arith.divf %18, %21 : vector<8x8xf32>
    %23 = arith.addf %9, %22 : vector<8x8xf32>
    %cst_11 = arith.constant dense<0.000000e+00> : vector<8x8xf32>
    %24 = tpu.matmul %22, %12, %cst_11 {dimension_numbers = #tpu.dot_dimension_numbers<[1], [0], [0], [1], [0, 0, 1, 1], [], []>} : vector<8x8xf32>, vector<8x8xf32>, vector<8x8xf32> -> vector<8x8xf32>
    %25 = vector.extract_strided_slice %8 {offsets = [0, 8], sizes = [8, 8], strides = [1, 1]} : vector<8x96xf32> to vector<8x8xf32>
    %26 = vector.extract_strided_slice %8 {offsets = [0, 40], sizes = [8, 8], strides = [1, 1]} : vector<8x96xf32> to vector<8x8xf32>
    %27 = vector.extract_strided_slice %8 {offsets = [0, 72], sizes = [8, 8], strides = [1, 1]} : vector<8x96xf32> to vector<8x8xf32>
    %cst_12 = arith.constant dense<0.000000e+00> : vector<8x8xf32>
    %28 = tpu.matmul %25, %26, %cst_12 {dimension_numbers = #tpu.dot_dimension_numbers<[1], [1], [0], [0], [0, 0, 1, 0], [], []>} : vector<8x8xf32>, vector<8x8xf32>, vector<8x8xf32> -> vector<8x8xf32>
    %cst_13 = arith.constant dense<0xFF800000> : vector<8xf32>
    %29 = vector.multi_reduction <maximumf>, %28, %cst_13 [1] : vector<8x8xf32> to vector<8xf32>
    %30 = vector.shape_cast %29 : vector<8xf32> to vector<8x1xf32>
    %31 = vector.broadcast %30 : vector<8x1xf32> to vector<8x8xf32>
    %32 = arith.subf %28, %31 : vector<8x8xf32>
    %33 = math.exp %32 : vector<8x8xf32>
    %cst_14 = arith.constant dense<0.000000e+00> : vector<8xf32>
    %34 = vector.multi_reduction <add>, %33, %cst_14 [1] : vector<8x8xf32> to vector<8xf32>
    %35 = vector.shape_cast %34 : vector<8xf32> to vector<8x1xf32>
    %36 = vector.broadcast %35 : vector<8x1xf32> to vector<8x8xf32>
    %37 = arith.divf %33, %36 : vector<8x8xf32>
    %38 = arith.addf %23, %37 : vector<8x8xf32>
    %cst_15 = arith.constant dense<0.000000e+00> : vector<8x8xf32>
    %39 = tpu.matmul %37, %27, %cst_15 {dimension_numbers = #tpu.dot_dimension_numbers<[1], [0], [0], [1], [0, 0, 1, 1], [], []>} : vector<8x8xf32>, vector<8x8xf32>, vector<8x8xf32> -> vector<8x8xf32>
    %40 = vector.extract_strided_slice %8 {offsets = [0, 16], sizes = [8, 8], strides = [1, 1]} : vector<8x96xf32> to vector<8x8xf32>
    %41 = vector.extract_strided_slice %8 {offsets = [0, 48], sizes = [8, 8], strides = [1, 1]} : vector<8x96xf32> to vector<8x8xf32>
    %42 = vector.extract_strided_slice %8 {offsets = [0, 80], sizes = [8, 8], strides = [1, 1]} : vector<8x96xf32> to vector<8x8xf32>
    %cst_16 = arith.constant dense<0.000000e+00> : vector<8x8xf32>
    %43 = tpu.matmul %40, %41, %cst_16 {dimension_numbers = #tpu.dot_dimension_numbers<[1], [1], [0], [0], [0, 0, 1, 0], [], []>} : vector<8x8xf32>, vector<8x8xf32>, vector<8x8xf32> -> vector<8x8xf32>
    %cst_17 = arith.constant dense<0xFF800000> : vector<8xf32>
    %44 = vector.multi_reduction <maximumf>, %43, %cst_17 [1] : vector<8x8xf32> to vector<8xf32>
    %45 = vector.shape_cast %44 : vector<8xf32> to vector<8x1xf32>
    %46 = vector.broadcast %45 : vector<8x1xf32> to vector<8x8xf32>
    %47 = arith.subf %43, %46 : vector<8x8xf32>
    %48 = math.exp %47 : vector<8x8xf32>
    %cst_18 = arith.constant dense<0.000000e+00> : vector<8xf32>
    %49 = vector.multi_reduction <add>, %48, %cst_18 [1] : vector<8x8xf32> to vector<8xf32>
    %50 = vector.shape_cast %49 : vector<8xf32> to vector<8x1xf32>
    %51 = vector.broadcast %50 : vector<8x1xf32> to vector<8x8xf32>
    %52 = arith.divf %48, %51 : vector<8x8xf32>
    %53 = arith.addf %38, %52 : vector<8x8xf32>
    %cst_19 = arith.constant dense<0.000000e+00> : vector<8x8xf32>
    %54 = tpu.matmul %52, %42, %cst_19 {dimension_numbers = #tpu.dot_dimension_numbers<[1], [0], [0], [1], [0, 0, 1, 1], [], []>} : vector<8x8xf32>, vector<8x8xf32>, vector<8x8xf32> -> vector<8x8xf32>
    %55 = vector.extract_strided_slice %8 {offsets = [0, 24], sizes = [8, 8], strides = [1, 1]} : vector<8x96xf32> to vector<8x8xf32>
    %56 = vector.extract_strided_slice %8 {offsets = [0, 56], sizes = [8, 8], strides = [1, 1]} : vector<8x96xf32> to vector<8x8xf32>
    %57 = vector.extract_strided_slice %8 {offsets = [0, 88], sizes = [8, 8], strides = [1, 1]} : vector<8x96xf32> to vector<8x8xf32>
    %cst_20 = arith.constant dense<0.000000e+00> : vector<8x8xf32>
    %58 = tpu.matmul %55, %56, %cst_20 {dimension_numbers = #tpu.dot_dimension_numbers<[1], [1], [0], [0], [0, 0, 1, 0], [], []>} : vector<8x8xf32>, vector<8x8xf32>, vector<8x8xf32> -> vector<8x8xf32>
    %cst_21 = arith.constant dense<0xFF800000> : vector<8xf32>
    %59 = vector.multi_reduction <maximumf>, %58, %cst_21 [1] : vector<8x8xf32> to vector<8xf32>
    %60 = vector.shape_cast %59 : vector<8xf32> to vector<8x1xf32>
    %61 = vector.broadcast %60 : vector<8x1xf32> to vector<8x8xf32>
    %62 = arith.subf %58, %61 : vector<8x8xf32>
    %63 = math.exp %62 : vector<8x8xf32>
    %cst_22 = arith.constant dense<0.000000e+00> : vector<8xf32>
    %64 = vector.multi_reduction <add>, %63, %cst_22 [1] : vector<8x8xf32> to vector<8xf32>
    %65 = vector.shape_cast %64 : vector<8xf32> to vector<8x1xf32>
    %66 = vector.broadcast %65 : vector<8x1xf32> to vector<8x8xf32>
    %67 = arith.divf %63, %66 : vector<8x8xf32>
    %68 = arith.addf %53, %67 : vector<8x8xf32>
    %cst_23 = arith.constant dense<0.000000e+00> : vector<8x8xf32>
    %69 = tpu.matmul %67, %57, %cst_23 {dimension_numbers = #tpu.dot_dimension_numbers<[1], [0], [0], [1], [0, 0, 1, 1], [], []>} : vector<8x8xf32>, vector<8x8xf32>, vector<8x8xf32> -> vector<8x8xf32>
    %70 = tpu.concatenate %24, %39, %54, %69 in 1 : vector<8x8xf32>, vector<8x8xf32>, vector<8x8xf32>, vector<8x8xf32> -> vector<8x32xf32>
    %cst_24 = arith.constant 2.500000e-01 : f32
    %71 = vector.broadcast %cst_24 : f32 to vector<8x8xf32>
    %72 = arith.mulf %68, %71 : vector<8x8xf32>
    %c0_25 = arith.constant 0 : index
    %c0_26 = arith.constant 0 : index
    %c0_27 = arith.constant 0 : index
    %c0_28 = arith.constant 0 : index
    %73 = vector.load %arg16[%c0_25, %c0_26, %c0_27, %c0_28] : memref<2x2x8x8xf32, #tpu.memory_space<vmem>>, vector<1x1x8x8xf32>
    %74 = vector.shape_cast %73 : vector<1x1x8x8xf32> to vector<8x8xf32>
    %75 = vector.shape_cast %72 : vector<8x8xf32> to vector<1x1x8x8xf32>
    tpu.vector_store %arg16[%c0_25, %c0_26, %c0_27, %c0_28], %75 {strides = array<i32>} : memref<2x2x8x8xf32, #tpu.memory_space<vmem>>, vector<1x1x8x8xf32>,
    %76 = vector.extract_strided_slice %7 {offsets = [8, 0], sizes = [8, 96], strides = [1, 1]} : vector<16x96xf32> to vector<8x96xf32>
    %cst_29 = arith.constant 0.000000e+00 : f32
    %77 = vector.broadcast %cst_29 : f32 to vector<8x8xf32>
    %78 = vector.extract_strided_slice %76 {offsets = [0, 0], sizes = [8, 8], strides = [1, 1]} : vector<8x96xf32> to vector<8x8xf32>
    %79 = vector.extract_strided_slice %76 {offsets = [0, 32], sizes = [8, 8], strides = [1, 1]} : vector<8x96xf32> to vector<8x8xf32>
    %80 = vector.extract_strided_slice %76 {offsets = [0, 64], sizes = [8, 8], strides = [1, 1]} : vector<8x96xf32> to vector<8x8xf32>
    %cst_30 = arith.constant dense<0.000000e+00> : vector<8x8xf32>
    %81 = tpu.matmul %78, %79, %cst_30 {dimension_numbers = #tpu.dot_dimension_numbers<[1], [1], [0], [0], [0, 0, 1, 0], [], []>} : vector<8x8xf32>, vector<8x8xf32>, vector<8x8xf32> -> vector<8x8xf32>
    %cst_31 = arith.constant dense<0xFF800000> : vector<8xf32>
    %82 = vector.multi_reduction <maximumf>, %81, %cst_31 [1] : vector<8x8xf32> to vector<8xf32>
    %83 = vector.shape_cast %82 : vector<8xf32> to vector<8x1xf32>
    %84 = vector.broadcast %83 : vector<8x1xf32> to vector<8x8xf32>
    %85 = arith.subf %81, %84 : vector<8x8xf32>
    %86 = math.exp %85 : vector<8x8xf32>
    %cst_32 = arith.constant dense<0.000000e+00> : vector<8xf32>
    %87 = vector.multi_reduction <add>, %86, %cst_32 [1] : vector<8x8xf32> to vector<8xf32>
    %88 = vector.shape_cast %87 : vector<8xf32> to vector<8x1xf32>
    %89 = vector.broadcast %88 : vector<8x1xf32> to vector<8x8xf32>
    %90 = arith.divf %86, %89 : vector<8x8xf32>
    %91 = arith.addf %77, %90 : vector<8x8xf32>
    %cst_33 = arith.constant dense<0.000000e+00> : vector<8x8xf32>
    %92 = tpu.matmul %90, %80, %cst_33 {dimension_numbers = #tpu.dot_dimension_numbers<[1], [0], [0], [1], [0, 0, 1, 1], [], []>} : vector<8x8xf32>, vector<8x8xf32>, vector<8x8xf32> -> vector<8x8xf32>
    %93 = vector.extract_strided_slice %76 {offsets = [0, 8], sizes = [8, 8], strides = [1, 1]} : vector<8x96xf32> to vector<8x8xf32>
    %94 = vector.extract_strided_slice %76 {offsets = [0, 40], sizes = [8, 8], strides = [1, 1]} : vector<8x96xf32> to vector<8x8xf32>
    %95 = vector.extract_strided_slice %76 {offsets = [0, 72], sizes = [8, 8], strides = [1, 1]} : vector<8x96xf32> to vector<8x8xf32>
    %cst_34 = arith.constant dense<0.000000e+00> : vector<8x8xf32>
    %96 = tpu.matmul %93, %94, %cst_34 {dimension_numbers = #tpu.dot_dimension_numbers<[1], [1], [0], [0], [0, 0, 1, 0], [], []>} : vector<8x8xf32>, vector<8x8xf32>, vector<8x8xf32> -> vector<8x8xf32>
    %cst_35 = arith.constant dense<0xFF800000> : vector<8xf32>
    %97 = vector.multi_reduction <maximumf>, %96, %cst_35 [1] : vector<8x8xf32> to vector<8xf32>
    %98 = vector.shape_cast %97 : vector<8xf32> to vector<8x1xf32>
    %99 = vector.broadcast %98 : vector<8x1xf32> to vector<8x8xf32>
    %100 = arith.subf %96, %99 : vector<8x8xf32>
    %101 = math.exp %100 : vector<8x8xf32>
    %cst_36 = arith.constant dense<0.000000e+00> : vector<8xf32>
    %102 = vector.multi_reduction <add>, %101, %cst_36 [1] : vector<8x8xf32> to vector<8xf32>
    %103 = vector.shape_cast %102 : vector<8xf32> to vector<8x1xf32>
    %104 = vector.broadcast %103 : vector<8x1xf32> to vector<8x8xf32>
    %105 = arith.divf %101, %104 : vector<8x8xf32>
    %106 = arith.addf %91, %105 : vector<8x8xf32>
    %cst_37 = arith.constant dense<0.000000e+00> : vector<8x8xf32>
    %107 = tpu.matmul %105, %95, %cst_37 {dimension_numbers = #tpu.dot_dimension_numbers<[1], [0], [0], [1], [0, 0, 1, 1], [], []>} : vector<8x8xf32>, vector<8x8xf32>, vector<8x8xf32> -> vector<8x8xf32>
    %108 = vector.extract_strided_slice %76 {offsets = [0, 16], sizes = [8, 8], strides = [1, 1]} : vector<8x96xf32> to vector<8x8xf32>
    %109 = vector.extract_strided_slice %76 {offsets = [0, 48], sizes = [8, 8], strides = [1, 1]} : vector<8x96xf32> to vector<8x8xf32>
    %110 = vector.extract_strided_slice %76 {offsets = [0, 80], sizes = [8, 8], strides = [1, 1]} : vector<8x96xf32> to vector<8x8xf32>
    %cst_38 = arith.constant dense<0.000000e+00> : vector<8x8xf32>
    %111 = tpu.matmul %108, %109, %cst_38 {dimension_numbers = #tpu.dot_dimension_numbers<[1], [1], [0], [0], [0, 0, 1, 0], [], []>} : vector<8x8xf32>, vector<8x8xf32>, vector<8x8xf32> -> vector<8x8xf32>
    %cst_39 = arith.constant dense<0xFF800000> : vector<8xf32>
    %112 = vector.multi_reduction <maximumf>, %111, %cst_39 [1] : vector<8x8xf32> to vector<8xf32>
    %113 = vector.shape_cast %112 : vector<8xf32> to vector<8x1xf32>
    %114 = vector.broadcast %113 : vector<8x1xf32> to vector<8x8xf32>
    %115 = arith.subf %111, %114 : vector<8x8xf32>
    %116 = math.exp %115 : vector<8x8xf32>
    %cst_40 = arith.constant dense<0.000000e+00> : vector<8xf32>
    %117 = vector.multi_reduction <add>, %116, %cst_40 [1] : vector<8x8xf32> to vector<8xf32>
    %118 = vector.shape_cast %117 : vector<8xf32> to vector<8x1xf32>
    %119 = vector.broadcast %118 : vector<8x1xf32> to vector<8x8xf32>
    %120 = arith.divf %116, %119 : vector<8x8xf32>
    %121 = arith.addf %106, %120 : vector<8x8xf32>
    %cst_41 = arith.constant dense<0.000000e+00> : vector<8x8xf32>
    %122 = tpu.matmul %120, %110, %cst_41 {dimension_numbers = #tpu.dot_dimension_numbers<[1], [0], [0], [1], [0, 0, 1, 1], [], []>} : vector<8x8xf32>, vector<8x8xf32>, vector<8x8xf32> -> vector<8x8xf32>
    %123 = vector.extract_strided_slice %76 {offsets = [0, 24], sizes = [8, 8], strides = [1, 1]} : vector<8x96xf32> to vector<8x8xf32>
    %124 = vector.extract_strided_slice %76 {offsets = [0, 56], sizes = [8, 8], strides = [1, 1]} : vector<8x96xf32> to vector<8x8xf32>
    %125 = vector.extract_strided_slice %76 {offsets = [0, 88], sizes = [8, 8], strides = [1, 1]} : vector<8x96xf32> to vector<8x8xf32>
    %cst_42 = arith.constant dense<0.000000e+00> : vector<8x8xf32>
    %126 = tpu.matmul %123, %124, %cst_42 {dimension_numbers = #tpu.dot_dimension_numbers<[1], [1], [0], [0], [0, 0, 1, 0], [], []>} : vector<8x8xf32>, vector<8x8xf32>, vector<8x8xf32> -> vector<8x8xf32>
    %cst_43 = arith.constant dense<0xFF800000> : vector<8xf32>
    %127 = vector.multi_reduction <maximumf>, %126, %cst_43 [1] : vector<8x8xf32> to vector<8xf32>
    %128 = vector.shape_cast %127 : vector<8xf32> to vector<8x1xf32>
    %129 = vector.broadcast %128 : vector<8x1xf32> to vector<8x8xf32>
    %130 = arith.subf %126, %129 : vector<8x8xf32>
    %131 = math.exp %130 : vector<8x8xf32>
    %cst_44 = arith.constant dense<0.000000e+00> : vector<8xf32>
    %132 = vector.multi_reduction <add>, %131, %cst_44 [1] : vector<8x8xf32> to vector<8xf32>
    %133 = vector.shape_cast %132 : vector<8xf32> to vector<8x1xf32>
    %134 = vector.broadcast %133 : vector<8x1xf32> to vector<8x8xf32>
    %135 = arith.divf %131, %134 : vector<8x8xf32>
    %136 = arith.addf %121, %135 : vector<8x8xf32>
    %cst_45 = arith.constant dense<0.000000e+00> : vector<8x8xf32>
    %137 = tpu.matmul %135, %125, %cst_45 {dimension_numbers = #tpu.dot_dimension_numbers<[1], [0], [0], [1], [0, 0, 1, 1], [], []>} : vector<8x8xf32>, vector<8x8xf32>, vector<8x8xf32> -> vector<8x8xf32>
    %138 = tpu.concatenate %92, %107, %122, %137 in 1 : vector<8x8xf32>, vector<8x8xf32>, vector<8x8xf32>, vector<8x8xf32> -> vector<8x32xf32>
    %cst_46 = arith.constant 2.500000e-01 : f32
    %139 = vector.broadcast %cst_46 : f32 to vector<8x8xf32>
    %140 = arith.mulf %136, %139 : vector<8x8xf32>
    %c0_47 = arith.constant 0 : index
    %c1 = arith.constant 1 : index
    %c0_48 = arith.constant 0 : index
    %c0_49 = arith.constant 0 : index
    %141 = vector.load %arg16[%c0_47, %c1, %c0_48, %c0_49] : memref<2x2x8x8xf32, #tpu.memory_space<vmem>>, vector<1x1x8x8xf32>
    %142 = vector.shape_cast %141 : vector<1x1x8x8xf32> to vector<8x8xf32>
    %143 = vector.shape_cast %140 : vector<8x8xf32> to vector<1x1x8x8xf32>
    tpu.vector_store %arg16[%c0_47, %c1, %c0_48, %c0_49], %143 {strides = array<i32>} : memref<2x2x8x8xf32, #tpu.memory_space<vmem>>, vector<1x1x8x8xf32>,
    %144 = tpu.concatenate %70, %138 in 0 : vector<8x32xf32>, vector<8x32xf32> -> vector<16x32xf32>
    %c0_50 = arith.constant 0 : index
    %c0_51 = arith.constant 0 : index
    %c0_52 = arith.constant 0 : index
    %145 = vector.load %arg3[%c0_50, %c0_51, %c0_52] : memref<2x32x32xf32, #tpu.memory_space<vmem>>, vector<1x32x32xf32>
    %146 = vector.shape_cast %145 : vector<1x32x32xf32> to vector<32x32xf32>
    %cst_53 = arith.constant dense<0.000000e+00> : vector<16x32xf32>
    %147 = tpu.matmul %144, %146, %cst_53 {dimension_numbers = #tpu.dot_dimension_numbers<[1], [0], [0], [1], [0, 0, 1, 1], [], []>} : vector<16x32xf32>, vector<32x32xf32>, vector<16x32xf32> -> vector<16x32xf32>
    %c0_54 = arith.constant 0 : index
    %c0_55 = arith.constant 0 : index
    %c0_56 = arith.constant 0 : index
    %148 = vector.load %arg4[%c0_54, %c0_55, %c0_56] : memref<2x1x32xf32, #tpu.memory_space<vmem>>, vector<1x1x32xf32>
    %149 = vector.shape_cast %148 : vector<1x1x32xf32> to vector<1x32xf32>
    %150 = vector.broadcast %149 : vector<1x32xf32> to vector<16x32xf32>
    %151 = arith.addf %147, %150 : vector<16x32xf32>
    %152 = arith.addf %0, %151 : vector<16x32xf32>
    %c0_57 = arith.constant 0 : index
    %c0_58 = arith.constant 0 : index
    %c0_59 = arith.constant 0 : index
    %153 = vector.load %arg9[%c0_57, %c0_58, %c0_59] : memref<2x1x32xf32, #tpu.memory_space<vmem>>, vector<1x1x32xf32>
    %154 = vector.shape_cast %153 : vector<1x1x32xf32> to vector<1x32xf32>
    %c0_60 = arith.constant 0 : index
    %c0_61 = arith.constant 0 : index
    %c0_62 = arith.constant 0 : index
    %155 = vector.load %arg10[%c0_60, %c0_61, %c0_62] : memref<2x1x32xf32, #tpu.memory_space<vmem>>, vector<1x1x32xf32>
    %156 = vector.shape_cast %155 : vector<1x1x32xf32> to vector<1x32xf32>
    %cst_63 = arith.constant dense<0.000000e+00> : vector<16xf32>
    %157 = vector.multi_reduction <add>, %152, %cst_63 [1] : vector<16x32xf32> to vector<16xf32>
    %158 = vector.shape_cast %157 : vector<16xf32> to vector<16x1xf32>
    %cst_64 = arith.constant 3.200000e+01 : f32
    %159 = vector.broadcast %cst_64 : f32 to vector<16x1xf32>
    %160 = arith.divf %158, %159 : vector<16x1xf32>
    %161 = vector.broadcast %160 : vector<16x1xf32> to vector<16x32xf32>
    %162 = arith.subf %152, %161 : vector<16x32xf32>
    %163 = arith.mulf %162, %162 : vector<16x32xf32>
    %cst_65 = arith.constant dense<0.000000e+00> : vector<16xf32>
    %164 = vector.multi_reduction <add>, %163, %cst_65 [1] : vector<16x32xf32> to vector<16xf32>
    %165 = vector.shape_cast %164 : vector<16xf32> to vector<16x1xf32>
    %cst_66 = arith.constant 3.200000e+01 : f32
    %166 = vector.broadcast %cst_66 : f32 to vector<16x1xf32>
    %167 = arith.divf %165, %166 : vector<16x1xf32>
    %168 = vector.broadcast %160 : vector<16x1xf32> to vector<16x32xf32>
    %169 = arith.subf %152, %168 : vector<16x32xf32>
    %cst_67 = arith.constant 9.99999974E-6 : f32
    %170 = vector.broadcast %cst_67 : f32 to vector<16x1xf32>
    %171 = arith.addf %167, %170 : vector<16x1xf32>
    %172 = math.rsqrt %171 : vector<16x1xf32>
    %173 = vector.broadcast %172 : vector<16x1xf32> to vector<16x32xf32>
    %174 = arith.mulf %169, %173 : vector<16x32xf32>
    %175 = vector.broadcast %154 : vector<1x32xf32> to vector<16x32xf32>
    %176 = arith.mulf %174, %175 : vector<16x32xf32>
    %177 = vector.broadcast %156 : vector<1x32xf32> to vector<16x32xf32>
    %178 = arith.addf %176, %177 : vector<16x32xf32>
    %c0_68 = arith.constant 0 : index
    %c0_69 = arith.constant 0 : index
    %c0_70 = arith.constant 0 : index
    %179 = vector.load %arg5[%c0_68, %c0_69, %c0_70] : memref<2x32x64xf32, #tpu.memory_space<vmem>>, vector<1x32x64xf32>
    %180 = vector.shape_cast %179 : vector<1x32x64xf32> to vector<32x64xf32>
    %cst_71 = arith.constant dense<0.000000e+00> : vector<16x64xf32>
    %181 = tpu.matmul %178, %180, %cst_71 {dimension_numbers = #tpu.dot_dimension_numbers<[1], [0], [0], [1], [0, 0, 1, 1], [], []>} : vector<16x32xf32>, vector<32x64xf32>, vector<16x64xf32> -> vector<16x64xf32>
    %c0_72 = arith.constant 0 : index
    %c0_73 = arith.constant 0 : index
    %c0_74 = arith.constant 0 : index
    %182 = vector.load %arg6[%c0_72, %c0_73, %c0_74] : memref<2x1x64xf32, #tpu.memory_space<vmem>>, vector<1x1x64xf32>
    %183 = vector.shape_cast %182 : vector<1x1x64xf32> to vector<1x64xf32>
    %184 = vector.broadcast %183 : vector<1x64xf32> to vector<16x64xf32>
    %185 = arith.addf %181, %184 : vector<16x64xf32>
    %cst_75 = arith.constant 0.000000e+00 : f32
    %186 = vector.broadcast %cst_75 : f32 to vector<16x64xf32>
    %187 = arith.maximumf %185, %186 : vector<16x64xf32>
    %c0_76 = arith.constant 0 : index
    %c0_77 = arith.constant 0 : index
    %c0_78 = arith.constant 0 : index
    %188 = vector.load %arg7[%c0_76, %c0_77, %c0_78] : memref<2x64x32xf32, #tpu.memory_space<vmem>>, vector<1x64x32xf32>
    %189 = vector.shape_cast %188 : vector<1x64x32xf32> to vector<64x32xf32>
    %cst_79 = arith.constant dense<0.000000e+00> : vector<16x32xf32>
    %190 = tpu.matmul %187, %189, %cst_79 {dimension_numbers = #tpu.dot_dimension_numbers<[1], [0], [0], [1], [0, 0, 1, 1], [], []>} : vector<16x64xf32>, vector<64x32xf32>, vector<16x32xf32> -> vector<16x32xf32>
    %c0_80 = arith.constant 0 : index
    %c0_81 = arith.constant 0 : index
    %c0_82 = arith.constant 0 : index
    %191 = vector.load %arg8[%c0_80, %c0_81, %c0_82] : memref<2x1x32xf32, #tpu.memory_space<vmem>>, vector<1x1x32xf32>
    %192 = vector.shape_cast %191 : vector<1x1x32xf32> to vector<1x32xf32>
    %193 = vector.broadcast %192 : vector<1x32xf32> to vector<16x32xf32>
    %194 = arith.addf %190, %193 : vector<16x32xf32>
    %195 = arith.addf %178, %194 : vector<16x32xf32>
    %c0_83 = arith.constant 0 : index
    %c0_84 = arith.constant 0 : index
    %c0_85 = arith.constant 0 : index
    %196 = vector.load %arg11[%c0_83, %c0_84, %c0_85] : memref<2x1x32xf32, #tpu.memory_space<vmem>>, vector<1x1x32xf32>
    %197 = vector.shape_cast %196 : vector<1x1x32xf32> to vector<1x32xf32>
    %c0_86 = arith.constant 0 : index
    %c0_87 = arith.constant 0 : index
    %c0_88 = arith.constant 0 : index
    %198 = vector.load %arg12[%c0_86, %c0_87, %c0_88] : memref<2x1x32xf32, #tpu.memory_space<vmem>>, vector<1x1x32xf32>
    %199 = vector.shape_cast %198 : vector<1x1x32xf32> to vector<1x32xf32>
    %cst_89 = arith.constant dense<0.000000e+00> : vector<16xf32>
    %200 = vector.multi_reduction <add>, %195, %cst_89 [1] : vector<16x32xf32> to vector<16xf32>
    %201 = vector.shape_cast %200 : vector<16xf32> to vector<16x1xf32>
    %cst_90 = arith.constant 3.200000e+01 : f32
    %202 = vector.broadcast %cst_90 : f32 to vector<16x1xf32>
    %203 = arith.divf %201, %202 : vector<16x1xf32>
    %204 = vector.broadcast %203 : vector<16x1xf32> to vector<16x32xf32>
    %205 = arith.subf %195, %204 : vector<16x32xf32>
    %206 = arith.mulf %205, %205 : vector<16x32xf32>
    %cst_91 = arith.constant dense<0.000000e+00> : vector<16xf32>
    %207 = vector.multi_reduction <add>, %206, %cst_91 [1] : vector<16x32xf32> to vector<16xf32>
    %208 = vector.shape_cast %207 : vector<16xf32> to vector<16x1xf32>
    %cst_92 = arith.constant 3.200000e+01 : f32
    %209 = vector.broadcast %cst_92 : f32 to vector<16x1xf32>
    %210 = arith.divf %208, %209 : vector<16x1xf32>
    %211 = vector.broadcast %203 : vector<16x1xf32> to vector<16x32xf32>
    %212 = arith.subf %195, %211 : vector<16x32xf32>
    %cst_93 = arith.constant 9.99999974E-6 : f32
    %213 = vector.broadcast %cst_93 : f32 to vector<16x1xf32>
    %214 = arith.addf %210, %213 : vector<16x1xf32>
    %215 = math.rsqrt %214 : vector<16x1xf32>
    %216 = vector.broadcast %215 : vector<16x1xf32> to vector<16x32xf32>
    %217 = arith.mulf %212, %216 : vector<16x32xf32>
    %218 = vector.broadcast %197 : vector<1x32xf32> to vector<16x32xf32>
    %219 = arith.mulf %217, %218 : vector<16x32xf32>
    %220 = vector.broadcast %199 : vector<1x32xf32> to vector<16x32xf32>
    %221 = arith.addf %219, %220 : vector<16x32xf32>
    %c1_94 = arith.constant 1 : index
    %c0_95 = arith.constant 0 : index
    %c0_96 = arith.constant 0 : index
    %222 = vector.load %arg1[%c1_94, %c0_95, %c0_96] : memref<2x32x96xf32, #tpu.memory_space<vmem>>, vector<1x32x96xf32>
    %223 = vector.shape_cast %222 : vector<1x32x96xf32> to vector<32x96xf32>
    %cst_97 = arith.constant dense<0.000000e+00> : vector<16x96xf32>
    %224 = tpu.matmul %221, %223, %cst_97 {dimension_numbers = #tpu.dot_dimension_numbers<[1], [0], [0], [1], [0, 0, 1, 1], [], []>} : vector<16x32xf32>, vector<32x96xf32>, vector<16x96xf32> -> vector<16x96xf32>
    %c1_98 = arith.constant 1 : index
    %c0_99 = arith.constant 0 : index
    %c0_100 = arith.constant 0 : index
    %225 = vector.load %arg2[%c1_98, %c0_99, %c0_100] : memref<2x1x96xf32, #tpu.memory_space<vmem>>, vector<1x1x96xf32>
    %226 = vector.shape_cast %225 : vector<1x1x96xf32> to vector<1x96xf32>
    %227 = vector.broadcast %226 : vector<1x96xf32> to vector<16x96xf32>
    %228 = arith.addf %224, %227 : vector<16x96xf32>
    %229 = vector.extract_strided_slice %228 {offsets = [0, 0], sizes = [8, 96], strides = [1, 1]} : vector<16x96xf32> to vector<8x96xf32>
    %cst_101 = arith.constant 0.000000e+00 : f32
    %230 = vector.broadcast %cst_101 : f32 to vector<8x8xf32>
    %231 = vector.extract_strided_slice %229 {offsets = [0, 0], sizes = [8, 8], strides = [1, 1]} : vector<8x96xf32> to vector<8x8xf32>
    %232 = vector.extract_strided_slice %229 {offsets = [0, 32], sizes = [8, 8], strides = [1, 1]} : vector<8x96xf32> to vector<8x8xf32>
    %233 = vector.extract_strided_slice %229 {offsets = [0, 64], sizes = [8, 8], strides = [1, 1]} : vector<8x96xf32> to vector<8x8xf32>
    %cst_102 = arith.constant dense<0.000000e+00> : vector<8x8xf32>
    %234 = tpu.matmul %231, %232, %cst_102 {dimension_numbers = #tpu.dot_dimension_numbers<[1], [1], [0], [0], [0, 0, 1, 0], [], []>} : vector<8x8xf32>, vector<8x8xf32>, vector<8x8xf32> -> vector<8x8xf32>
    %cst_103 = arith.constant dense<0xFF800000> : vector<8xf32>
    %235 = vector.multi_reduction <maximumf>, %234, %cst_103 [1] : vector<8x8xf32> to vector<8xf32>
    %236 = vector.shape_cast %235 : vector<8xf32> to vector<8x1xf32>
    %237 = vector.broadcast %236 : vector<8x1xf32> to vector<8x8xf32>
    %238 = arith.subf %234, %237 : vector<8x8xf32>
    %239 = math.exp %238 : vector<8x8xf32>
    %cst_104 = arith.constant dense<0.000000e+00> : vector<8xf32>
    %240 = vector.multi_reduction <add>, %239, %cst_104 [1] : vector<8x8xf32> to vector<8xf32>
    %241 = vector.shape_cast %240 : vector<8xf32> to vector<8x1xf32>
    %242 = vector.broadcast %241 : vector<8x1xf32> to vector<8x8xf32>
    %243 = arith.divf %239, %242 : vector<8x8xf32>
    %244 = arith.addf %230, %243 : vector<8x8xf32>
    %cst_105 = arith.constant dense<0.000000e+00> : vector<8x8xf32>
    %245 = tpu.matmul %243, %233, %cst_105 {dimension_numbers = #tpu.dot_dimension_numbers<[1], [0], [0], [1], [0, 0, 1, 1], [], []>} : vector<8x8xf32>, vector<8x8xf32>, vector<8x8xf32> -> vector<8x8xf32>
    %246 = vector.extract_strided_slice %229 {offsets = [0, 8], sizes = [8, 8], strides = [1, 1]} : vector<8x96xf32> to vector<8x8xf32>
    %247 = vector.extract_strided_slice %229 {offsets = [0, 40], sizes = [8, 8], strides = [1, 1]} : vector<8x96xf32> to vector<8x8xf32>
    %248 = vector.extract_strided_slice %229 {offsets = [0, 72], sizes = [8, 8], strides = [1, 1]} : vector<8x96xf32> to vector<8x8xf32>
    %cst_106 = arith.constant dense<0.000000e+00> : vector<8x8xf32>
    %249 = tpu.matmul %246, %247, %cst_106 {dimension_numbers = #tpu.dot_dimension_numbers<[1], [1], [0], [0], [0, 0, 1, 0], [], []>} : vector<8x8xf32>, vector<8x8xf32>, vector<8x8xf32> -> vector<8x8xf32>
    %cst_107 = arith.constant dense<0xFF800000> : vector<8xf32>
    %250 = vector.multi_reduction <maximumf>, %249, %cst_107 [1] : vector<8x8xf32> to vector<8xf32>
    %251 = vector.shape_cast %250 : vector<8xf32> to vector<8x1xf32>
    %252 = vector.broadcast %251 : vector<8x1xf32> to vector<8x8xf32>
    %253 = arith.subf %249, %252 : vector<8x8xf32>
    %254 = math.exp %253 : vector<8x8xf32>
    %cst_108 = arith.constant dense<0.000000e+00> : vector<8xf32>
    %255 = vector.multi_reduction <add>, %254, %cst_108 [1] : vector<8x8xf32> to vector<8xf32>
    %256 = vector.shape_cast %255 : vector<8xf32> to vector<8x1xf32>
    %257 = vector.broadcast %256 : vector<8x1xf32> to vector<8x8xf32>
    %258 = arith.divf %254, %257 : vector<8x8xf32>
    %259 = arith.addf %244, %258 : vector<8x8xf32>
    %cst_109 = arith.constant dense<0.000000e+00> : vector<8x8xf32>
    %260 = tpu.matmul %258, %248, %cst_109 {dimension_numbers = #tpu.dot_dimension_numbers<[1], [0], [0], [1], [0, 0, 1, 1], [], []>} : vector<8x8xf32>, vector<8x8xf32>, vector<8x8xf32> -> vector<8x8xf32>
    %261 = vector.extract_strided_slice %229 {offsets = [0, 16], sizes = [8, 8], strides = [1, 1]} : vector<8x96xf32> to vector<8x8xf32>
    %262 = vector.extract_strided_slice %229 {offsets = [0, 48], sizes = [8, 8], strides = [1, 1]} : vector<8x96xf32> to vector<8x8xf32>
    %263 = vector.extract_strided_slice %229 {offsets = [0, 80], sizes = [8, 8], strides = [1, 1]} : vector<8x96xf32> to vector<8x8xf32>
    %cst_110 = arith.constant dense<0.000000e+00> : vector<8x8xf32>
    %264 = tpu.matmul %261, %262, %cst_110 {dimension_numbers = #tpu.dot_dimension_numbers<[1], [1], [0], [0], [0, 0, 1, 0], [], []>} : vector<8x8xf32>, vector<8x8xf32>, vector<8x8xf32> -> vector<8x8xf32>
    %cst_111 = arith.constant dense<0xFF800000> : vector<8xf32>
    %265 = vector.multi_reduction <maximumf>, %264, %cst_111 [1] : vector<8x8xf32> to vector<8xf32>
    %266 = vector.shape_cast %265 : vector<8xf32> to vector<8x1xf32>
    %267 = vector.broadcast %266 : vector<8x1xf32> to vector<8x8xf32>
    %268 = arith.subf %264, %267 : vector<8x8xf32>
    %269 = math.exp %268 : vector<8x8xf32>
    %cst_112 = arith.constant dense<0.000000e+00> : vector<8xf32>
    %270 = vector.multi_reduction <add>, %269, %cst_112 [1] : vector<8x8xf32> to vector<8xf32>
    %271 = vector.shape_cast %270 : vector<8xf32> to vector<8x1xf32>
    %272 = vector.broadcast %271 : vector<8x1xf32> to vector<8x8xf32>
    %273 = arith.divf %269, %272 : vector<8x8xf32>
    %274 = arith.addf %259, %273 : vector<8x8xf32>
    %cst_113 = arith.constant dense<0.000000e+00> : vector<8x8xf32>
    %275 = tpu.matmul %273, %263, %cst_113 {dimension_numbers = #tpu.dot_dimension_numbers<[1], [0], [0], [1], [0, 0, 1, 1], [], []>} : vector<8x8xf32>, vector<8x8xf32>, vector<8x8xf32> -> vector<8x8xf32>
    %276 = vector.extract_strided_slice %229 {offsets = [0, 24], sizes = [8, 8], strides = [1, 1]} : vector<8x96xf32> to vector<8x8xf32>
    %277 = vector.extract_strided_slice %229 {offsets = [0, 56], sizes = [8, 8], strides = [1, 1]} : vector<8x96xf32> to vector<8x8xf32>
    %278 = vector.extract_strided_slice %229 {offsets = [0, 88], sizes = [8, 8], strides = [1, 1]} : vector<8x96xf32> to vector<8x8xf32>
    %cst_114 = arith.constant dense<0.000000e+00> : vector<8x8xf32>
    %279 = tpu.matmul %276, %277, %cst_114 {dimension_numbers = #tpu.dot_dimension_numbers<[1], [1], [0], [0], [0, 0, 1, 0], [], []>} : vector<8x8xf32>, vector<8x8xf32>, vector<8x8xf32> -> vector<8x8xf32>
    %cst_115 = arith.constant dense<0xFF800000> : vector<8xf32>
    %280 = vector.multi_reduction <maximumf>, %279, %cst_115 [1] : vector<8x8xf32> to vector<8xf32>
    %281 = vector.shape_cast %280 : vector<8xf32> to vector<8x1xf32>
    %282 = vector.broadcast %281 : vector<8x1xf32> to vector<8x8xf32>
    %283 = arith.subf %279, %282 : vector<8x8xf32>
    %284 = math.exp %283 : vector<8x8xf32>
    %cst_116 = arith.constant dense<0.000000e+00> : vector<8xf32>
    %285 = vector.multi_reduction <add>, %284, %cst_116 [1] : vector<8x8xf32> to vector<8xf32>
    %286 = vector.shape_cast %285 : vector<8xf32> to vector<8x1xf32>
    %287 = vector.broadcast %286 : vector<8x1xf32> to vector<8x8xf32>
    %288 = arith.divf %284, %287 : vector<8x8xf32>
    %289 = arith.addf %274, %288 : vector<8x8xf32>
    %cst_117 = arith.constant dense<0.000000e+00> : vector<8x8xf32>
    %290 = tpu.matmul %288, %278, %cst_117 {dimension_numbers = #tpu.dot_dimension_numbers<[1], [0], [0], [1], [0, 0, 1, 1], [], []>} : vector<8x8xf32>, vector<8x8xf32>, vector<8x8xf32> -> vector<8x8xf32>
    %291 = tpu.concatenate %245, %260, %275, %290 in 1 : vector<8x8xf32>, vector<8x8xf32>, vector<8x8xf32>, vector<8x8xf32> -> vector<8x32xf32>
    %cst_118 = arith.constant 2.500000e-01 : f32
    %292 = vector.broadcast %cst_118 : f32 to vector<8x8xf32>
    %293 = arith.mulf %289, %292 : vector<8x8xf32>
    %c1_119 = arith.constant 1 : index
    %c0_120 = arith.constant 0 : index
    %c0_121 = arith.constant 0 : index
    %c0_122 = arith.constant 0 : index
    %294 = vector.load %arg16[%c1_119, %c0_120, %c0_121, %c0_122] : memref<2x2x8x8xf32, #tpu.memory_space<vmem>>, vector<1x1x8x8xf32>
    %295 = vector.shape_cast %294 : vector<1x1x8x8xf32> to vector<8x8xf32>
    %296 = vector.shape_cast %293 : vector<8x8xf32> to vector<1x1x8x8xf32>
    tpu.vector_store %arg16[%c1_119, %c0_120, %c0_121, %c0_122], %296 {strides = array<i32>} : memref<2x2x8x8xf32, #tpu.memory_space<vmem>>, vector<1x1x8x8xf32>,
    %297 = vector.extract_strided_slice %228 {offsets = [8, 0], sizes = [8, 96], strides = [1, 1]} : vector<16x96xf32> to vector<8x96xf32>
    %cst_123 = arith.constant 0.000000e+00 : f32
    %298 = vector.broadcast %cst_123 : f32 to vector<8x8xf32>
    %299 = vector.extract_strided_slice %297 {offsets = [0, 0], sizes = [8, 8], strides = [1, 1]} : vector<8x96xf32> to vector<8x8xf32>
    %300 = vector.extract_strided_slice %297 {offsets = [0, 32], sizes = [8, 8], strides = [1, 1]} : vector<8x96xf32> to vector<8x8xf32>
    %301 = vector.extract_strided_slice %297 {offsets = [0, 64], sizes = [8, 8], strides = [1, 1]} : vector<8x96xf32> to vector<8x8xf32>
    %cst_124 = arith.constant dense<0.000000e+00> : vector<8x8xf32>
    %302 = tpu.matmul %299, %300, %cst_124 {dimension_numbers = #tpu.dot_dimension_numbers<[1], [1], [0], [0], [0, 0, 1, 0], [], []>} : vector<8x8xf32>, vector<8x8xf32>, vector<8x8xf32> -> vector<8x8xf32>
    %cst_125 = arith.constant dense<0xFF800000> : vector<8xf32>
    %303 = vector.multi_reduction <maximumf>, %302, %cst_125 [1] : vector<8x8xf32> to vector<8xf32>
    %304 = vector.shape_cast %303 : vector<8xf32> to vector<8x1xf32>
    %305 = vector.broadcast %304 : vector<8x1xf32> to vector<8x8xf32>
    %306 = arith.subf %302, %305 : vector<8x8xf32>
    %307 = math.exp %306 : vector<8x8xf32>
    %cst_126 = arith.constant dense<0.000000e+00> : vector<8xf32>
    %308 = vector.multi_reduction <add>, %307, %cst_126 [1] : vector<8x8xf32> to vector<8xf32>
    %309 = vector.shape_cast %308 : vector<8xf32> to vector<8x1xf32>
    %310 = vector.broadcast %309 : vector<8x1xf32> to vector<8x8xf32>
    %311 = arith.divf %307, %310 : vector<8x8xf32>
    %312 = arith.addf %298, %311 : vector<8x8xf32>
    %cst_127 = arith.constant dense<0.000000e+00> : vector<8x8xf32>
    %313 = tpu.matmul %311, %301, %cst_127 {dimension_numbers = #tpu.dot_dimension_numbers<[1], [0], [0], [1], [0, 0, 1, 1], [], []>} : vector<8x8xf32>, vector<8x8xf32>, vector<8x8xf32> -> vector<8x8xf32>
    %314 = vector.extract_strided_slice %297 {offsets = [0, 8], sizes = [8, 8], strides = [1, 1]} : vector<8x96xf32> to vector<8x8xf32>
    %315 = vector.extract_strided_slice %297 {offsets = [0, 40], sizes = [8, 8], strides = [1, 1]} : vector<8x96xf32> to vector<8x8xf32>
    %316 = vector.extract_strided_slice %297 {offsets = [0, 72], sizes = [8, 8], strides = [1, 1]} : vector<8x96xf32> to vector<8x8xf32>
    %cst_128 = arith.constant dense<0.000000e+00> : vector<8x8xf32>
    %317 = tpu.matmul %314, %315, %cst_128 {dimension_numbers = #tpu.dot_dimension_numbers<[1], [1], [0], [0], [0, 0, 1, 0], [], []>} : vector<8x8xf32>, vector<8x8xf32>, vector<8x8xf32> -> vector<8x8xf32>
    %cst_129 = arith.constant dense<0xFF800000> : vector<8xf32>
    %318 = vector.multi_reduction <maximumf>, %317, %cst_129 [1] : vector<8x8xf32> to vector<8xf32>
    %319 = vector.shape_cast %318 : vector<8xf32> to vector<8x1xf32>
    %320 = vector.broadcast %319 : vector<8x1xf32> to vector<8x8xf32>
    %321 = arith.subf %317, %320 : vector<8x8xf32>
    %322 = math.exp %321 : vector<8x8xf32>
    %cst_130 = arith.constant dense<0.000000e+00> : vector<8xf32>
    %323 = vector.multi_reduction <add>, %322, %cst_130 [1] : vector<8x8xf32> to vector<8xf32>
    %324 = vector.shape_cast %323 : vector<8xf32> to vector<8x1xf32>
    %325 = vector.broadcast %324 : vector<8x1xf32> to vector<8x8xf32>
    %326 = arith.divf %322, %325 : vector<8x8xf32>
    %327 = arith.addf %312, %326 : vector<8x8xf32>
    %cst_131 = arith.constant dense<0.000000e+00> : vector<8x8xf32>
    %328 = tpu.matmul %326, %316, %cst_131 {dimension_numbers = #tpu.dot_dimension_numbers<[1], [0], [0], [1], [0, 0, 1, 1], [], []>} : vector<8x8xf32>, vector<8x8xf32>, vector<8x8xf32> -> vector<8x8xf32>
    %329 = vector.extract_strided_slice %297 {offsets = [0, 16], sizes = [8, 8], strides = [1, 1]} : vector<8x96xf32> to vector<8x8xf32>
    %330 = vector.extract_strided_slice %297 {offsets = [0, 48], sizes = [8, 8], strides = [1, 1]} : vector<8x96xf32> to vector<8x8xf32>
    %331 = vector.extract_strided_slice %297 {offsets = [0, 80], sizes = [8, 8], strides = [1, 1]} : vector<8x96xf32> to vector<8x8xf32>
    %cst_132 = arith.constant dense<0.000000e+00> : vector<8x8xf32>
    %332 = tpu.matmul %329, %330, %cst_132 {dimension_numbers = #tpu.dot_dimension_numbers<[1], [1], [0], [0], [0, 0, 1, 0], [], []>} : vector<8x8xf32>, vector<8x8xf32>, vector<8x8xf32> -> vector<8x8xf32>
    %cst_133 = arith.constant dense<0xFF800000> : vector<8xf32>
    %333 = vector.multi_reduction <maximumf>, %332, %cst_133 [1] : vector<8x8xf32> to vector<8xf32>
    %334 = vector.shape_cast %333 : vector<8xf32> to vector<8x1xf32>
    %335 = vector.broadcast %334 : vector<8x1xf32> to vector<8x8xf32>
    %336 = arith.subf %332, %335 : vector<8x8xf32>
    %337 = math.exp %336 : vector<8x8xf32>
    %cst_134 = arith.constant dense<0.000000e+00> : vector<8xf32>
    %338 = vector.multi_reduction <add>, %337, %cst_134 [1] : vector<8x8xf32> to vector<8xf32>
    %339 = vector.shape_cast %338 : vector<8xf32> to vector<8x1xf32>
    %340 = vector.broadcast %339 : vector<8x1xf32> to vector<8x8xf32>
    %341 = arith.divf %337, %340 : vector<8x8xf32>
    %342 = arith.addf %327, %341 : vector<8x8xf32>
    %cst_135 = arith.constant dense<0.000000e+00> : vector<8x8xf32>
    %343 = tpu.matmul %341, %331, %cst_135 {dimension_numbers = #tpu.dot_dimension_numbers<[1], [0], [0], [1], [0, 0, 1, 1], [], []>} : vector<8x8xf32>, vector<8x8xf32>, vector<8x8xf32> -> vector<8x8xf32>
    %344 = vector.extract_strided_slice %297 {offsets = [0, 24], sizes = [8, 8], strides = [1, 1]} : vector<8x96xf32> to vector<8x8xf32>
    %345 = vector.extract_strided_slice %297 {offsets = [0, 56], sizes = [8, 8], strides = [1, 1]} : vector<8x96xf32> to vector<8x8xf32>
    %346 = vector.extract_strided_slice %297 {offsets = [0, 88], sizes = [8, 8], strides = [1, 1]} : vector<8x96xf32> to vector<8x8xf32>
    %cst_136 = arith.constant dense<0.000000e+00> : vector<8x8xf32>
    %347 = tpu.matmul %344, %345, %cst_136 {dimension_numbers = #tpu.dot_dimension_numbers<[1], [1], [0], [0], [0, 0, 1, 0], [], []>} : vector<8x8xf32>, vector<8x8xf32>, vector<8x8xf32> -> vector<8x8xf32>
    %cst_137 = arith.constant dense<0xFF800000> : vector<8xf32>
    %348 = vector.multi_reduction <maximumf>, %347, %cst_137 [1] : vector<8x8xf32> to vector<8xf32>
    %349 = vector.shape_cast %348 : vector<8xf32> to vector<8x1xf32>
    %350 = vector.broadcast %349 : vector<8x1xf32> to vector<8x8xf32>
    %351 = arith.subf %347, %350 : vector<8x8xf32>
    %352 = math.exp %351 : vector<8x8xf32>
    %cst_138 = arith.constant dense<0.000000e+00> : vector<8xf32>
    %353 = vector.multi_reduction <add>, %352, %cst_138 [1] : vector<8x8xf32> to vector<8xf32>
    %354 = vector.shape_cast %353 : vector<8xf32> to vector<8x1xf32>
    %355 = vector.broadcast %354 : vector<8x1xf32> to vector<8x8xf32>
    %356 = arith.divf %352, %355 : vector<8x8xf32>
    %357 = arith.addf %342, %356 : vector<8x8xf32>
    %cst_139 = arith.constant dense<0.000000e+00> : vector<8x8xf32>
    %358 = tpu.matmul %356, %346, %cst_139 {dimension_numbers = #tpu.dot_dimension_numbers<[1], [0], [0], [1], [0, 0, 1, 1], [], []>} : vector<8x8xf32>, vector<8x8xf32>, vector<8x8xf32> -> vector<8x8xf32>
    %359 = tpu.concatenate %313, %328, %343, %358 in 1 : vector<8x8xf32>, vector<8x8xf32>, vector<8x8xf32>, vector<8x8xf32> -> vector<8x32xf32>
    %cst_140 = arith.constant 2.500000e-01 : f32
    %360 = vector.broadcast %cst_140 : f32 to vector<8x8xf32>
    %361 = arith.mulf %357, %360 : vector<8x8xf32>
    %c1_141 = arith.constant 1 : index
    %c1_142 = arith.constant 1 : index
    %c0_143 = arith.constant 0 : index
    %c0_144 = arith.constant 0 : index
    %362 = vector.load %arg16[%c1_141, %c1_142, %c0_143, %c0_144] : memref<2x2x8x8xf32, #tpu.memory_space<vmem>>, vector<1x1x8x8xf32>
    %363 = vector.shape_cast %362 : vector<1x1x8x8xf32> to vector<8x8xf32>
    %364 = vector.shape_cast %361 : vector<8x8xf32> to vector<1x1x8x8xf32>
    tpu.vector_store %arg16[%c1_141, %c1_142, %c0_143, %c0_144], %364 {strides = array<i32>} : memref<2x2x8x8xf32, #tpu.memory_space<vmem>>, vector<1x1x8x8xf32>,
    %365 = tpu.concatenate %291, %359 in 0 : vector<8x32xf32>, vector<8x32xf32> -> vector<16x32xf32>
    %c1_145 = arith.constant 1 : index
    %c0_146 = arith.constant 0 : index
    %c0_147 = arith.constant 0 : index
    %366 = vector.load %arg3[%c1_145, %c0_146, %c0_147] : memref<2x32x32xf32, #tpu.memory_space<vmem>>, vector<1x32x32xf32>
    %367 = vector.shape_cast %366 : vector<1x32x32xf32> to vector<32x32xf32>
    %cst_148 = arith.constant dense<0.000000e+00> : vector<16x32xf32>
    %368 = tpu.matmul %365, %367, %cst_148 {dimension_numbers = #tpu.dot_dimension_numbers<[1], [0], [0], [1], [0, 0, 1, 1], [], []>} : vector<16x32xf32>, vector<32x32xf32>, vector<16x32xf32> -> vector<16x32xf32>
    %c1_149 = arith.constant 1 : index
    %c0_150 = arith.constant 0 : index
    %c0_151 = arith.constant 0 : index
    %369 = vector.load %arg4[%c1_149, %c0_150, %c0_151] : memref<2x1x32xf32, #tpu.memory_space<vmem>>, vector<1x1x32xf32>
    %370 = vector.shape_cast %369 : vector<1x1x32xf32> to vector<1x32xf32>
    %371 = vector.broadcast %370 : vector<1x32xf32> to vector<16x32xf32>
    %372 = arith.addf %368, %371 : vector<16x32xf32>
    %373 = arith.addf %221, %372 : vector<16x32xf32>
    %c1_152 = arith.constant 1 : index
    %c0_153 = arith.constant 0 : index
    %c0_154 = arith.constant 0 : index
    %374 = vector.load %arg9[%c1_152, %c0_153, %c0_154] : memref<2x1x32xf32, #tpu.memory_space<vmem>>, vector<1x1x32xf32>
    %375 = vector.shape_cast %374 : vector<1x1x32xf32> to vector<1x32xf32>
    %c1_155 = arith.constant 1 : index
    %c0_156 = arith.constant 0 : index
    %c0_157 = arith.constant 0 : index
    %376 = vector.load %arg10[%c1_155, %c0_156, %c0_157] : memref<2x1x32xf32, #tpu.memory_space<vmem>>, vector<1x1x32xf32>
    %377 = vector.shape_cast %376 : vector<1x1x32xf32> to vector<1x32xf32>
    %cst_158 = arith.constant dense<0.000000e+00> : vector<16xf32>
    %378 = vector.multi_reduction <add>, %373, %cst_158 [1] : vector<16x32xf32> to vector<16xf32>
    %379 = vector.shape_cast %378 : vector<16xf32> to vector<16x1xf32>
    %cst_159 = arith.constant 3.200000e+01 : f32
    %380 = vector.broadcast %cst_159 : f32 to vector<16x1xf32>
    %381 = arith.divf %379, %380 : vector<16x1xf32>
    %382 = vector.broadcast %381 : vector<16x1xf32> to vector<16x32xf32>
    %383 = arith.subf %373, %382 : vector<16x32xf32>
    %384 = arith.mulf %383, %383 : vector<16x32xf32>
    %cst_160 = arith.constant dense<0.000000e+00> : vector<16xf32>
    %385 = vector.multi_reduction <add>, %384, %cst_160 [1] : vector<16x32xf32> to vector<16xf32>
    %386 = vector.shape_cast %385 : vector<16xf32> to vector<16x1xf32>
    %cst_161 = arith.constant 3.200000e+01 : f32
    %387 = vector.broadcast %cst_161 : f32 to vector<16x1xf32>
    %388 = arith.divf %386, %387 : vector<16x1xf32>
    %389 = vector.broadcast %381 : vector<16x1xf32> to vector<16x32xf32>
    %390 = arith.subf %373, %389 : vector<16x32xf32>
    %cst_162 = arith.constant 9.99999974E-6 : f32
    %391 = vector.broadcast %cst_162 : f32 to vector<16x1xf32>
    %392 = arith.addf %388, %391 : vector<16x1xf32>
    %393 = math.rsqrt %392 : vector<16x1xf32>
    %394 = vector.broadcast %393 : vector<16x1xf32> to vector<16x32xf32>
    %395 = arith.mulf %390, %394 : vector<16x32xf32>
    %396 = vector.broadcast %375 : vector<1x32xf32> to vector<16x32xf32>
    %397 = arith.mulf %395, %396 : vector<16x32xf32>
    %398 = vector.broadcast %377 : vector<1x32xf32> to vector<16x32xf32>
    %399 = arith.addf %397, %398 : vector<16x32xf32>
    %c1_163 = arith.constant 1 : index
    %c0_164 = arith.constant 0 : index
    %c0_165 = arith.constant 0 : index
    %400 = vector.load %arg5[%c1_163, %c0_164, %c0_165] : memref<2x32x64xf32, #tpu.memory_space<vmem>>, vector<1x32x64xf32>
    %401 = vector.shape_cast %400 : vector<1x32x64xf32> to vector<32x64xf32>
    %cst_166 = arith.constant dense<0.000000e+00> : vector<16x64xf32>
    %402 = tpu.matmul %399, %401, %cst_166 {dimension_numbers = #tpu.dot_dimension_numbers<[1], [0], [0], [1], [0, 0, 1, 1], [], []>} : vector<16x32xf32>, vector<32x64xf32>, vector<16x64xf32> -> vector<16x64xf32>
    %c1_167 = arith.constant 1 : index
    %c0_168 = arith.constant 0 : index
    %c0_169 = arith.constant 0 : index
    %403 = vector.load %arg6[%c1_167, %c0_168, %c0_169] : memref<2x1x64xf32, #tpu.memory_space<vmem>>, vector<1x1x64xf32>
    %404 = vector.shape_cast %403 : vector<1x1x64xf32> to vector<1x64xf32>
    %405 = vector.broadcast %404 : vector<1x64xf32> to vector<16x64xf32>
    %406 = arith.addf %402, %405 : vector<16x64xf32>
    %cst_170 = arith.constant 0.000000e+00 : f32
    %407 = vector.broadcast %cst_170 : f32 to vector<16x64xf32>
    %408 = arith.maximumf %406, %407 : vector<16x64xf32>
    %c1_171 = arith.constant 1 : index
    %c0_172 = arith.constant 0 : index
    %c0_173 = arith.constant 0 : index
    %409 = vector.load %arg7[%c1_171, %c0_172, %c0_173] : memref<2x64x32xf32, #tpu.memory_space<vmem>>, vector<1x64x32xf32>
    %410 = vector.shape_cast %409 : vector<1x64x32xf32> to vector<64x32xf32>
    %cst_174 = arith.constant dense<0.000000e+00> : vector<16x32xf32>
    %411 = tpu.matmul %408, %410, %cst_174 {dimension_numbers = #tpu.dot_dimension_numbers<[1], [0], [0], [1], [0, 0, 1, 1], [], []>} : vector<16x64xf32>, vector<64x32xf32>, vector<16x32xf32> -> vector<16x32xf32>
    %c1_175 = arith.constant 1 : index
    %c0_176 = arith.constant 0 : index
    %c0_177 = arith.constant 0 : index
    %412 = vector.load %arg8[%c1_175, %c0_176, %c0_177] : memref<2x1x32xf32, #tpu.memory_space<vmem>>, vector<1x1x32xf32>
    %413 = vector.shape_cast %412 : vector<1x1x32xf32> to vector<1x32xf32>
    %414 = vector.broadcast %413 : vector<1x32xf32> to vector<16x32xf32>
    %415 = arith.addf %411, %414 : vector<16x32xf32>
    %416 = arith.addf %399, %415 : vector<16x32xf32>
    %c1_178 = arith.constant 1 : index
    %c0_179 = arith.constant 0 : index
    %c0_180 = arith.constant 0 : index
    %417 = vector.load %arg11[%c1_178, %c0_179, %c0_180] : memref<2x1x32xf32, #tpu.memory_space<vmem>>, vector<1x1x32xf32>
    %418 = vector.shape_cast %417 : vector<1x1x32xf32> to vector<1x32xf32>
    %c1_181 = arith.constant 1 : index
    %c0_182 = arith.constant 0 : index
    %c0_183 = arith.constant 0 : index
    %419 = vector.load %arg12[%c1_181, %c0_182, %c0_183] : memref<2x1x32xf32, #tpu.memory_space<vmem>>, vector<1x1x32xf32>
    %420 = vector.shape_cast %419 : vector<1x1x32xf32> to vector<1x32xf32>
    %cst_184 = arith.constant dense<0.000000e+00> : vector<16xf32>
    %421 = vector.multi_reduction <add>, %416, %cst_184 [1] : vector<16x32xf32> to vector<16xf32>
    %422 = vector.shape_cast %421 : vector<16xf32> to vector<16x1xf32>
    %cst_185 = arith.constant 3.200000e+01 : f32
    %423 = vector.broadcast %cst_185 : f32 to vector<16x1xf32>
    %424 = arith.divf %422, %423 : vector<16x1xf32>
    %425 = vector.broadcast %424 : vector<16x1xf32> to vector<16x32xf32>
    %426 = arith.subf %416, %425 : vector<16x32xf32>
    %427 = arith.mulf %426, %426 : vector<16x32xf32>
    %cst_186 = arith.constant dense<0.000000e+00> : vector<16xf32>
    %428 = vector.multi_reduction <add>, %427, %cst_186 [1] : vector<16x32xf32> to vector<16xf32>
    %429 = vector.shape_cast %428 : vector<16xf32> to vector<16x1xf32>
    %cst_187 = arith.constant 3.200000e+01 : f32
    %430 = vector.broadcast %cst_187 : f32 to vector<16x1xf32>
    %431 = arith.divf %429, %430 : vector<16x1xf32>
    %432 = vector.broadcast %424 : vector<16x1xf32> to vector<16x32xf32>
    %433 = arith.subf %416, %432 : vector<16x32xf32>
    %cst_188 = arith.constant 9.99999974E-6 : f32
    %434 = vector.broadcast %cst_188 : f32 to vector<16x1xf32>
    %435 = arith.addf %431, %434 : vector<16x1xf32>
    %436 = math.rsqrt %435 : vector<16x1xf32>
    %437 = vector.broadcast %436 : vector<16x1xf32> to vector<16x32xf32>
    %438 = arith.mulf %433, %437 : vector<16x32xf32>
    %439 = vector.broadcast %418 : vector<1x32xf32> to vector<16x32xf32>
    %440 = arith.mulf %438, %439 : vector<16x32xf32>
    %441 = vector.broadcast %420 : vector<1x32xf32> to vector<16x32xf32>
    %442 = arith.addf %440, %441 : vector<16x32xf32>
    %c0_189 = arith.constant 0 : index
    %c0_190 = arith.constant 0 : index
    %443 = vector.load %arg13[%c0_189, %c0_190] : memref<1x32xf32, #tpu.memory_space<vmem>>, vector<1x32xf32>
    %c0_191 = arith.constant 0 : index
    %c0_192 = arith.constant 0 : index
    %444 = vector.load %arg14[%c0_191, %c0_192] : memref<1x32xf32, #tpu.memory_space<vmem>>, vector<1x32xf32>
    %cst_193 = arith.constant dense<0.000000e+00> : vector<16xf32>
    %445 = vector.multi_reduction <add>, %442, %cst_193 [1] : vector<16x32xf32> to vector<16xf32>
    %446 = vector.shape_cast %445 : vector<16xf32> to vector<16x1xf32>
    %cst_194 = arith.constant 3.200000e+01 : f32
    %447 = vector.broadcast %cst_194 : f32 to vector<16x1xf32>
    %448 = arith.divf %446, %447 : vector<16x1xf32>
    %449 = vector.broadcast %448 : vector<16x1xf32> to vector<16x32xf32>
    %450 = arith.subf %442, %449 : vector<16x32xf32>
    %451 = arith.mulf %450, %450 : vector<16x32xf32>
    %cst_195 = arith.constant dense<0.000000e+00> : vector<16xf32>
    %452 = vector.multi_reduction <add>, %451, %cst_195 [1] : vector<16x32xf32> to vector<16xf32>
    %453 = vector.shape_cast %452 : vector<16xf32> to vector<16x1xf32>
    %cst_196 = arith.constant 3.200000e+01 : f32
    %454 = vector.broadcast %cst_196 : f32 to vector<16x1xf32>
    %455 = arith.divf %453, %454 : vector<16x1xf32>
    %456 = vector.broadcast %448 : vector<16x1xf32> to vector<16x32xf32>
    %457 = arith.subf %442, %456 : vector<16x32xf32>
    %cst_197 = arith.constant 9.99999974E-6 : f32
    %458 = vector.broadcast %cst_197 : f32 to vector<16x1xf32>
    %459 = arith.addf %455, %458 : vector<16x1xf32>
    %460 = math.rsqrt %459 : vector<16x1xf32>
    %461 = vector.broadcast %460 : vector<16x1xf32> to vector<16x32xf32>
    %462 = arith.mulf %457, %461 : vector<16x32xf32>
    %463 = vector.broadcast %443 : vector<1x32xf32> to vector<16x32xf32>
    %464 = arith.mulf %462, %463 : vector<16x32xf32>
    %465 = vector.broadcast %444 : vector<1x32xf32> to vector<16x32xf32>
    %466 = arith.addf %464, %465 : vector<16x32xf32>
    %c0_198 = arith.constant 0 : index
    %c0_199 = arith.constant 0 : index
    %467 = vector.load %arg15[%c0_198, %c0_199] : memref<16x32xf32, #tpu.memory_space<vmem>>, vector<16x32xf32>
    tpu.vector_store %arg15[%c0_198, %c0_199], %466 {strides = array<i32>} : memref<16x32xf32, #tpu.memory_space<vmem>>, vector<16x32xf32>,
    return
  }
}

</mosaic_0001>

<bundles_post_ra>
// kernel: ru_decoder.1
= control target key start
LH: loop header
LB: loop body
LE: loop exit
PB: predicated region body
PF: predicated region fallthrough
CT: control target
= control target key end

     0   :  { %s5248_s0 = inlined_call_operand.vmem [shape: f32[16,32], index: 0, kind: input, shape index: {}]   ;;  %s5249_s1 = inlined_call_operand.vmem [shape: f32[2,32,96], index: 1, kind: input, shape index: {}]   ;;  %s5250_s2 = inlined_call_operand.vmem [shape: f32[2,1,96], index: 2, kind: input, shape index: {}]   ;;  %s5251_s3 = inlined_call_operand.vmem [shape: f32[2,32,32], index: 3, kind: input, shape index: {}]   ;;  %s5252_s4 = inlined_call_operand.vmem [shape: f32[2,1,32], index: 4, kind: input, shape index: {}]   ;;  %s5253_s5 = inlined_call_operand.vmem [shape: f32[2,32,64], index: 5, kind: input, shape index: {}]   ;;  %s5254_s6 = inlined_call_operand.vmem [shape: f32[2,1,64], index: 6, kind: input, shape index: {}]   ;;  %s5255_s7 = inlined_call_operand.vmem [shape: f32[2,64,32], index: 7, kind: input, shape index: {}]   ;;  %s5256_s8 = inlined_call_operand.vmem [shape: f32[2,1,32], index: 8, kind: input, shape index: {}]   ;;  %s5257_s9 = inlined_call_operand.vmem [shape: f32[2,1,32], index: 9, kind: input, shape index: {}]   ;;  %s5258_s10 = inlined_call_operand.vmem [shape: f32[2,1,32], index: 10, kind: input, shape index: {}]   ;;  %s5259_s11 = inlined_call_operand.vmem [shape: f32[2,1,32], index: 11, kind: input, shape index: {}]   ;;  %s5260_s12 = inlined_call_operand.vmem [shape: f32[2,1,32], index: 12, kind: input, shape index: {}]   ;;  %s5261_s13 = inlined_call_operand.vmem [shape: f32[1,32], index: 13, kind: input, shape index: {}]   ;;  %s5262_s14 = inlined_call_operand.hbm [shape: f32[1,32], index: 14, kind: input, shape index: {}]   ;;  %s5263_s15 = inlined_call_operand.vmem [shape: f32[16,32], index: 15, kind: output, shape index: {0}]   ;;  %s5264_s16 = inlined_call_operand.hbm [shape: f32[2,2,8,8], index: 16, kind: output, shape index: {1}]  }
   0x1   :  { %5282 = sst [smem:[#allocation8_spill]] %s5248_s0 }
   0x2   :  { %22 = vsyncpa [#allocation3], 0 }
   0x3   :  { %23 = vsyncpa [#allocation4], 0  ;;  %s4532_s21 = smov [#allocation2]   ;;  %s4484_s25 = scalar_lea.hbm %s5262_s14, 16 }
   0x4   :  { %s58_s22 = sshll.u32 %s4532_s21, 4  ;;  %p4485_p0 = scmp.ne.s32.totalorder %s5262_s14, %s4484_s25  ;;  %s59_s22 = int_to_ptr.vmem [resolvable:$true] %s58_s22 }
   0x5   :  { %p4488_p1 = scmp.lt.u32.totalorder %s4484_s25, %s5262_s14 }
   0x7   :  { %p4490_p2 = pnand %p4488_p1, %p4485_p0 }
   0x9   :  { %4493 = shalt.err (!%p4490_p2)
}
   0xa   :  { %s4494_s30 = scalar_lea.vmem %s59_s22, 16  ;;  %s4498_s0 = scalar_lea.vmem %s59_s22, 32 }
   0xb   :  { %p4495_p3 = scmp.ne.s32.totalorder %s59_s22, %s4494_s30  ;;  %p4499_p4 = scmp.lt.s32.totalorder %s59_s22, %s59_s22 }
   0xc   :  { %p4500_p5 = scmp.lt.s32.totalorder %s4498_s0, %s4494_s30 }
   0xe   :  { %p4501_p6 = por %p4500_p5, %p4499_p4 }
  0x10   :  { %p4502_p7 = pnand %p4501_p6, %p4495_p3 }
  0x12   :  { %4505 = shalt.err (!%p4502_p7)
}
  0x13   :  { %61 = dma.hbm_to_vmem [thread:$0]  %s5262_s14, 16, %s59_s22, [#allocation3]  }
  0x14   :  { %4528 = dma.done.wait [#allocation3], 16  }
  0x15   :  { %4529 = vsyncadd [#allocation3], 4294967280  ;;  %vm78_vm0 = vcmask 261120   ;;  %v67_v0 = vld [vmem:[%s5249_s1] sm:$0xff]  ;;  %v68_v1 = vld [vmem:[%s5249_s1 + $0x8] sm:$0xff]  ;;  %s5283_s28 = sld [smem:[#allocation8_spill]] }
  0x16   :  { %v69_v2 = vld [vmem:[%s5249_s1 + $0x10] sm:$0xff]  ;;  %v4301_v3 = vpack.c.bf16 %v68_v1, %v67_v0  ;;  %v70_v4 = vld [vmem:[%s5249_s1 + $0x18] sm:$0xff]  ;;  %v4533_v8 = vmov 0.0   ;;  %vm4534_vm1 = vmmov 0   ;;  %v3807_v9 = vld [vmem:[%s5250_s2] ss:$0 sm:$0xff] }
  0x17   :  { %v4305_v6 = vpack.c.bf16 %v70_v4, %v69_v2  ;;  %4058 = vmatprep.subr.mxu0 %v4533_v8  ;;  %4060 = vmatprep.mubr.msk.f32.mxu0 %vm4534_vm1, %v4533_v8  ;;  %s4535_s18 = smov 120   ;;  %s4536_s19 = smov 96   ;;  %vm163_vm2 = vcmask 64512   ;;  %vm837_vm3 = vcmask 130048   ;;  %vm839_vm4 = vcmask 195584  }
  0x18   :  { %4302 = vmatprep.subr.bf16.mxu1 %v4301_v3  ;;  %s5276_s20 = smov 80   ;;  %s4538_s21 = smov 88   ;;  %vm1772_vm5 = vcmask 523264  }
  0x19   :  { %4304 = vmatpush3.bf16.msra.mxu1 %v4301_v3  ;;  %s5274_s23 = smov 72   ;;  %s4540_s24 = smov 112  }
  0x1a   :  { %4306 = vmatprep.subr.bf16.mxu1 %v4305_v6  ;;  %s4541_s25 = smov 104   ;;  %s5270_s26 = smov 56  }
  0x1b   :  { %v4663_v5 = vld [vmem:[%s5283_s28] sm:$0xff]  ;;  %v4670_v7 = vld [vmem:[%s5283_s28 + $0x8] sm:$0xff]  ;;  %s5272_s27 = smov 64   ;;  %s5268_s14 = smov 40  }
  0x1c   :  { %4045 = vmatprep.mubr.msk.f32.mxu1 %vm78_vm0, %v4663_v5  ;;  %s5266_s22 = smov 48   ;;  %s4546_s28 = smov 8  }
  0x1d   :  { %4308 = vmatpush3.bf16.msra.mxu1 %v4305_v6  ;;  %s5280_s29 = smov 16   ;;  %s5278_s30 = smov 24  }
  0x1e   :  { %4048 = vmatprep.subr.mxu1 %v4533_v8  ;;  %s5285_s17 = smov 72  }
  0x20   :  { %4046 = vmatmul.mubr.msk.f32.vlgmr.msra.gmra.mrb[0].mxu1 %vm78_vm0, %v4670_v7 }
  0x21   :  { %4050 = vmatprep.mubr.msk.f32.mxu1 %vm4534_vm1, %v4533_v8 }
  0xf3   :  { %v4047_v10 = vpop.f32.mrb[0].mxu1 }
  0xf4   :  { %v151_v11 = vpop.f32.mrb[1].mxu1  ;;  %v4697_v13 = vadd.f32 %v4047_v10, %v3807_v9 }
  0xf5   :  { %v4683_v12 = vadd.f32 %v3807_v9, %v151_v11 }
  0xf7   :  { %326 = vrot.lane.b32.xlu1 %v4683_v12, %s4535_s18  ;;  %161 = vrot.lane.b32.xlu0 %v4683_v12, %s4536_s19 }
  0xfb   :  { %494 = vrot.lane.b32.xlu1 %v4683_v12, %s5276_s20  ;;  %328 = vrot.lane.b32.xlu0 %v4683_v12, %s4538_s21 }
  0xff   :  { %660 = vrot.lane.b32.xlu1 %v4683_v12, %s5274_s23  ;;  %492 = vrot.lane.b32.xlu0 %v4683_v12, %s4540_s24 }
 0x103   :  { %844 = vrot.lane.b32.xlu1 %v4697_v13, %s4536_s19  ;;  %658 = vrot.lane.b32.xlu0 %v4683_v12, %s4541_s25 }
 0x107   :  { %1008 = vrot.lane.b32.xlu1 %v4697_v13, %s4535_s18  ;;  %1010 = vrot.lane.b32.xlu0 %v4697_v13, %s4538_s21 }
 0x10b   :  { %1174 = vrot.lane.b32.xlu1 %v4697_v13, %s4540_s24  ;;  %1176 = vrot.lane.b32.xlu0 %v4697_v13, %s5276_s20  ;;  %s5286_s20 = smov 64  }
 0x10f   :  { %1340 = vrot.lane.b32.xlu1 %v4697_v13, %s4541_s25  ;;  %1342 = vrot.lane.b32.xlu0 %v4697_v13, %s5274_s23 }
 0x113   :  { %416 = vrot.lane.b32.xlu1 %v4683_v12, %s5270_s26  ;;  %250 = vrot.lane.b32.xlu0 %v4683_v12, %s5272_s27 }
 0x169   :  { %v327_v14 = vpop.permute.xlu1 %326  ;;  %v162_v15 = vpop.permute.xlu0 %161 }
 0x16a   :  { %4049 = vmatpush3.xpose.msk.msra.mxu1 %vm163_vm2, %v162_v15 }
 0x16b   :  { %4053 = vmatprep.subr.mxu1 %v4533_v8 }
 0x16d   :  { %v495_v16 = vpop.permute.xlu1 %494  ;;  %4051 = vmatmul.mubr.msk.f32.vlgmr.msra.gmra.mrb[2].mxu1 %vm163_vm2, %v4683_v12  ;;  %v329_v17 = vpop.permute.xlu0 %328 }
 0x16e   :  { %4059 = vmatpush3.xpose.msk.msra.mxu0 %vm163_vm2, %v329_v17  ;;  %4055 = vmatprep.mubr.msk.f32.mxu1 %vm4534_vm1, %v4533_v8 }
 0x16f   :  { %4068 = vmatprep.subr.mxu0 %v4533_v8 }
 0x171   :  { %v661_v18 = vpop.permute.xlu1 %660  ;;  %4061 = vmatmul.mubr.msk.f32.vlgmr.msra.gmra.mrb[0].mxu0 %vm163_vm2, %v327_v14  ;;  %v493_v19 = vpop.permute.xlu0 %492 }
 0x172   :  { %4069 = vmatpush3.xpose.msk.msra.mxu0 %vm163_vm2, %v495_v16  ;;  %4070 = vmatprep.mubr.msk.f32.mxu0 %vm4534_vm1, %v4533_v8 }
 0x173   :  { %4078 = vmatprep.subr.mxu0 %v4533_v8 }
 0x175   :  { %4071 = vmatmul.mubr.msk.f32.vlgmr.msra.gmra.mrb[2].mxu0 %vm163_vm2, %v493_v19  ;;  %v659_v20 = vpop.permute.xlu0 %658  ;;  %v845_v21 = vpop.permute.xlu1 %844 }
 0x176   :  { %4079 = vmatpush3.xpose.msk.msra.mxu0 %vm163_vm2, %v661_v18  ;;  %4080 = vmatprep.mubr.msk.f32.mxu0 %vm4534_vm1, %v4533_v8 }
 0x177   :  { %4088 = vmatprep.subr.mxu0 %v4533_v8 }
 0x179   :  { %4081 = vmatmul.mubr.msk.f32.vlgmr.msra.gmra.mrb[4].mxu0 %vm163_vm2, %v659_v20  ;;  %v1011_v22 = vpop.permute.xlu0 %1010  ;;  %v1009_v23 = vpop.permute.xlu1 %1008 }
 0x17a   :  { %4089 = vmatpush3.xpose.msk.msra.mxu0 %vm163_vm2, %v845_v21  ;;  %4090 = vmatprep.mubr.msk.f32.mxu0 %vm4534_vm1, %v4533_v8 }
 0x17b   :  { %4098 = vmatprep.subr.mxu0 %v4533_v8 }
 0x17d   :  { %4091 = vmatmul.mubr.msk.f32.vlgmr.msra.gmra.mrb[6].mxu0 %vm163_vm2, %v4697_v13  ;;  %v1177_v24 = vpop.permute.xlu0 %1176  ;;  %v1175_v26 = vpop.permute.xlu1 %1174 }
 0x17e   :  { %4099 = vmatpush3.xpose.msk.msra.mxu0 %vm163_vm2, %v1011_v22  ;;  %4100 = vmatprep.mubr.msk.f32.mxu0 %vm4534_vm1, %v4533_v8 }
 0x17f   :  { %4108 = vmatprep.subr.mxu0 %v4533_v8 }
 0x181   :  { %4101 = vmatmul.mubr.msk.f32.vlgmr.msra.gmra.mrb[8].mxu0 %vm163_vm2, %v1009_v23  ;;  %v1343_v25 = vpop.permute.xlu0 %1342  ;;  %v1341_v28 = vpop.permute.xlu1 %1340 }
 0x182   :  { %4109 = vmatpush3.xpose.msk.msra.mxu0 %vm163_vm2, %v1177_v24  ;;  %4110 = vmatprep.mubr.msk.f32.mxu0 %vm4534_vm1, %v4533_v8 }
 0x183   :  { %4118 = vmatprep.subr.mxu0 %v4533_v8 }
 0x185   :  { %4111 = vmatmul.mubr.msk.f32.vlgmr.msra.gmra.mrb[10].mxu0 %vm163_vm2, %v1175_v26  ;;  %v251_v27 = vpop.permute.xlu0 %250  ;;  %v4771_v53 = vpop.permute.xlu1 %416 }
 0x186   :  { %4054 = vmatpush3.msra.mxu1 %v251_v27  ;;  %4119 = vmatpush3.xpose.msk.msra.mxu0 %vm163_vm2, %v1343_v25 }
 0x187   :  { %4120 = vmatprep.mubr.msk.f32.mxu0 %vm4534_vm1, %v4533_v8  ;;  %4063 = vmatprep.subr.mxu1 %v4533_v8 }
 0x189   :  { %4121 = vmatmul.mubr.msk.f32.vlgmr.msra.gmra.mrb[12].mxu0 %vm163_vm2, %v1341_v28 }
 0x240   :  { %v234_v29 = vpop.f32.mrb[2].mxu1 }
 0x241   :  { %v4052_v30 = vpop.f32.mrb[3].mxu1  ;;  %v238_v31 = vsel %vm163_vm2, %v234_v29, -inf }
 0x242   :  { %239 = vmax.xlane.f32.xlu0 %v238_v31 }
 0x244   :  { %v400_v32 = vpop.f32.mrb[0].mxu0 }
 0x245   :  { %v4062_v33 = vpop.f32.mrb[1].mxu0  ;;  %v404_v34 = vsel %vm163_vm2, %v400_v32, -inf }
 0x246   :  { %405 = vmax.xlane.f32.xlu1 %v404_v34 }
 0x248   :  { %v566_v35 = vpop.f32.mrb[2].mxu0 }
 0x249   :  { %v4072_v36 = vpop.f32.mrb[3].mxu0  ;;  %v570_v37 = vsel %vm163_vm2, %v566_v35, -inf }
 0x24a   :  { %571 = vmax.xlane.f32.xlu0 %v570_v37 }
 0x24c   :  { %v732_v38 = vpop.f32.mrb[4].mxu0 }
 0x24d   :  { %v4082_v39 = vpop.f32.mrb[5].mxu0  ;;  %v736_v40 = vsel %vm163_vm2, %v732_v38, -inf }
 0x24e   :  { %737 = vmax.xlane.f32.xlu0 %v736_v40 }
 0x250   :  { %v916_v41 = vpop.f32.mrb[6].mxu0 }
 0x251   :  { %v4092_v42 = vpop.f32.mrb[7].mxu0  ;;  %v920_v43 = vsel %vm163_vm2, %v916_v41, -inf }
 0x252   :  { %921 = vmax.xlane.f32.xlu1 %v920_v43 }
 0x254   :  { %v1082_v44 = vpop.f32.mrb[8].mxu0 }
 0x255   :  { %v4102_v45 = vpop.f32.mrb[9].mxu0  ;;  %v1086_v46 = vsel %vm163_vm2, %v1082_v44, -inf }
 0x256   :  { %1087 = vmax.xlane.f32.xlu0 %v1086_v46 }
 0x258   :  { %v1248_v47 = vpop.f32.mrb[10].mxu0 }
 0x259   :  { %v4112_v48 = vpop.f32.mrb[11].mxu0  ;;  %v1252_v49 = vsel %vm163_vm2, %v1248_v47, -inf }
 0x25a   :  { %1253 = vmax.xlane.f32.xlu1 %v1252_v49 }
 0x25c   :  { %v1414_v50 = vpop.f32.mrb[12].mxu0 }
 0x25d   :  { %v4122_v51 = vpop.f32.mrb[13].mxu0  ;;  %v1418_v52 = vsel %vm163_vm2, %v1414_v50, -inf }
 0x25e   :  { %1419 = vmax.xlane.f32.xlu0 %v1418_v52 }
 0x26b   :  { %748 = vrot.lane.b32.xlu1 %v4683_v12, %s5268_s14 }
 0x274   :  { %582 = vrot.lane.b32.xlu0 %v4683_v12, %s5266_s22 }
 0x2cf   :  { %v240_v54 = vpop.xlane.xlu0 %239 }
 0x2d0   :  { %v241_v55 = vsub.f32 %v234_v29, %v240_v54 }
 0x2d2   :  { %v242_v56 = vmul.f32 1.442695, %v241_v55 }
 0x2d3   :  { %v406_v57 = vpop.xlane.xlu1 %405 }
 0x2d4   :  { %4400 = vpow2.f32 %v242_v56  ;;  %v407_v58 = vsub.f32 %v400_v32, %v406_v57 }
 0x2d6   :  { %v408_v59 = vmul.f32 1.442695, %v407_v58 }
 0x2d7   :  { %v572_v60 = vpop.xlane.xlu0 %571 }
 0x2d8   :  { %4402 = vpow2.f32 %v408_v59  ;;  %v573_v61 = vsub.f32 %v566_v35, %v572_v60 }
 0x2da   :  { %v574_v62 = vmul.f32 1.442695, %v573_v61 }
 0x2db   :  { %v738_v63 = vpop.xlane.xlu0 %737 }
 0x2dc   :  { %4404 = vpow2.f32 %v574_v62  ;;  %v739_v0 = vsub.f32 %v732_v38, %v738_v63 }
 0x2de   :  { %v4401_v1 = vpop.eup %4400  ;;  %v740_v2 = vmul.f32 1.442695, %v739_v0 }
 0x2df   :  { %v244_v3 = vsel %vm163_vm2, %v4401_v1, 0.0  ;;  %v922_v14 = vpop.xlane.xlu1 %921 }
 0x2e0   :  { %4406 = vpow2.f32 %v740_v2  ;;  %245 = vadd.xlane.f32.xlu1 %v244_v3  ;;  %v923_v15 = vsub.f32 %v916_v41, %v922_v14 }
 0x2e2   :  { %v4403_v4 = vpop.eup %4402  ;;  %v924_v19 = vmul.f32 1.442695, %v923_v15 }
 0x2e3   :  { %v410_v6 = vsel %vm163_vm2, %v4403_v4, 0.0  ;;  %v1088_v16 = vpop.xlane.xlu0 %1087 }
 0x2e4   :  { %411 = vadd.xlane.f32.xlu0 %v410_v6  ;;  %v1089_v18 = vsub.f32 %v1082_v44, %v1088_v16  ;;  %4408 = vpow2.f32 %v924_v19  ;;  %v1524_v19 = vld [vmem:[%s5251_s3] sm:$0xff] }
 0x2e6   :  { %v4405_v9 = vpop.eup %4404  ;;  %v1090_v22 = vmul.f32 1.442695, %v1089_v18 }
 0x2e7   :  { %v576_v10 = vsel %vm163_vm2, %v4405_v9, 0.0  ;;  %v1254_v17 = vpop.xlane.xlu1 %1253 }
 0x2e8   :  { %577 = vadd.xlane.f32.xlu1 %v576_v10  ;;  %v1255_v20 = vsub.f32 %v1248_v47, %v1254_v17  ;;  %4410 = vpow2.f32 %v1090_v22  ;;  %v1526_v22 = vld [vmem:[%s5251_s3 + $0x10] sm:$0xff] }
 0x2ea   :  { %v4776_v11 = vpop.eup %4406  ;;  %v1256_v23 = vmul.f32 1.442695, %v1255_v20  ;;  %v1525_v20 = vld [vmem:[%s5251_s3 + $0x8] sm:$0xff] }
 0x2eb   :  { %v742_v12 = vsel %vm163_vm2, %v4776_v11, 0.0  ;;  %v1420_v21 = vpop.xlane.xlu0 %1419  ;;  %v749_v34 = vpop.permute.xlu1 %748 }
 0x2ec   :  { %743 = vadd.xlane.f32.xlu0 %v742_v12  ;;  %v1421_v24 = vsub.f32 %v1414_v50, %v1420_v21  ;;  %4412 = vpow2.f32 %v1256_v23  ;;  %v4309_v21 = vpack.c.bf16 %v1525_v20, %v1524_v19  ;;  %v1527_v23 = vld [vmem:[%s5251_s3 + $0x18] sm:$0xff] }
 0x2ee   :  { %v1422_v25 = vmul.f32 1.442695, %v1421_v24  ;;  %v4784_v26 = vpop.eup %4408  ;;  %4310 = vmatprep.subr.bf16.mxu0 %v4309_v21  ;;  %v4313_v24 = vpack.c.bf16 %v1527_v23, %v1526_v22  ;;  %v3837_v23 = vld [vmem:[%s5257_s9] ss:$0 sm:$0xff] }
 0x2ef   :  { %v926_v28 = vsel %vm163_vm2, %v4784_v26, 0.0  ;;  %v583_v35 = vpop.permute.xlu0 %582  ;;  %4312 = vmatpush3.bf16.msra.mxu0 %v4309_v21 }
 0x2f0   :  { %4414 = vpow2.f32 %v1422_v25  ;;  %4314 = vmatprep.subr.bf16.mxu0 %v4313_v24 }
 0x2f2   :  { %v4786_v27 = vpop.eup %4410 }
 0x2f3   :  { %v1092_v31 = vsel %vm163_vm2, %v4786_v27, 0.0  ;;  %4316 = vmatpush3.bf16.msra.mxu0 %v4313_v24 }
 0x2f6   :  { %v4790_v29 = vpop.eup %4412 }
 0x2f7   :  { %v1258_v30 = vsel %vm163_vm2, %v4790_v29, 0.0 }
 0x2f9   :  { %1098 = vrot.lane.b32.xlu1 %v4697_v13, %s5270_s26 }
 0x2fa   :  { %v4796_v32 = vpop.eup %4414 }
 0x2fb   :  { %v1424_v33 = vsel %vm163_vm2, %v4796_v32, 0.0 }
 0x302   :  { %932 = vrot.lane.b32.xlu0 %v4697_v13, %s5272_s27 }
 0x31d   :  { %927 = vadd.xlane.f32.xlu1 %v926_v28 }
 0x321   :  { %1259 = vadd.xlane.f32.xlu1 %v1258_v30  ;;  %1093 = vadd.xlane.f32.xlu0 %v1092_v31 }
 0x325   :  { %1425 = vadd.xlane.f32.xlu1 %v1424_v33 }
 0x336   :  { %1430 = vrot.lane.b32.xlu1 %v4697_v13, %s5268_s14 }
 0x337   :  { %1264 = vrot.lane.b32.xlu0 %v4697_v13, %s5266_s22 }
 0x36d   :  { %v246_v36 = vpop.xlane.xlu1 %245 }
 0x36e   :  { %4416 = vrcp.f32 %v246_v36 }
 0x371   :  { %v412_v37 = vpop.xlane.xlu0 %411 }
 0x372   :  { %4418 = vrcp.f32 %v412_v37 }
 0x375   :  { %v578_v38 = vpop.xlane.xlu1 %577 }
 0x376   :  { %4420 = vrcp.f32 %v578_v38 }
 0x378   :  { %v4417_v39 = vpop.eup %4416 }
 0x379   :  { %v248_v40 = vmul.f32 %v4417_v39, %v4401_v1  ;;  %v744_v41 = vpop.xlane.xlu0 %743  ;;  %v1099_v52 = vpop.permute.xlu1 %1098 }
 0x37a   :  { %4422 = vrcp.f32 %v744_v41 }
 0x37b   :  { %4056 = vmatmul.mubr.msk.f32.vlgmr.msra.gmra.mrb[4].mxu1 %vm163_vm2, %v248_v40 }
 0x37c   :  { %v4419_v42 = vpop.eup %4418  ;;  %4064 = vmatpush3.msra.mxu1 %v4771_v53  ;;  %4065 = vmatprep.mubr.msk.f32.mxu1 %vm4534_vm1, %v4533_v8 }
 0x37d   :  { %v414_v13 = vmul.f32 %v4419_v42, %v4403_v4  ;;  %4073 = vmatprep.subr.mxu1 %v4533_v8  ;;  %v933_v50 = vpop.permute.xlu0 %932 }
 0x37f   :  { %4066 = vmatmul.mubr.msk.f32.vlgmr.msra.gmra.mrb[6].mxu1 %vm163_vm2, %v414_v13  ;;  %v415_v45 = vadd.f32 %v414_v13, %v248_v40 }
 0x380   :  { %v4421_v43 = vpop.eup %4420  ;;  %4074 = vmatpush3.msra.mxu1 %v583_v35  ;;  %4075 = vmatprep.mubr.msk.f32.mxu1 %vm4534_vm1, %v4533_v8 }
 0x381   :  { %v580_v44 = vmul.f32 %v4421_v43, %v4405_v9  ;;  %4083 = vmatprep.subr.mxu1 %v4533_v8 }
 0x383   :  { %4076 = vmatmul.mubr.msk.f32.vlgmr.msra.gmra.mrb[8].mxu1 %vm163_vm2, %v580_v44  ;;  %v581_v47 = vadd.f32 %v580_v44, %v415_v45  ;;  %v3834_v44 = vld [vmem:[%s5252_s4] ss:$0 sm:$0xff] }
 0x384   :  { %v4423_v46 = vpop.eup %4422  ;;  %4084 = vmatpush3.msra.mxu1 %v749_v34  ;;  %4085 = vmatprep.mubr.msk.f32.mxu1 %vm4534_vm1, %v4533_v8 }
 0x385   :  { %v746_v48 = vmul.f32 %v4423_v46, %v4776_v11  ;;  %4093 = vmatprep.subr.mxu1 %v4533_v8 }
 0x387   :  { %v747_v49 = vadd.f32 %v746_v48, %v581_v47  ;;  %4086 = vmatmul.mubr.msk.f32.vlgmr.msra.gmra.mrb[10].mxu1 %vm163_vm2, %v746_v48 }
 0x388   :  { %4094 = vmatpush3.msra.mxu1 %v933_v50  ;;  %4095 = vmatprep.mubr.msk.f32.mxu1 %vm4534_vm1, %v4533_v8 }
 0x389   :  { %v841_v51 = vmul.f32 0.25, %v747_v49  ;;  %4103 = vmatprep.subr.mxu1 %v4533_v8 }
 0x38b   :  { %842 = vst.msk [vmem:[#allocation5] sm:$0xff] %vm163_vm2, %v841_v51 }
 0x3aa   :  { %v928_v53 = vpop.xlane.xlu1 %927 }
 0x3ab   :  { %4424 = vrcp.f32 %v928_v53 }
 0x3ae   :  { %v1260_v54 = vpop.xlane.xlu1 %1259  ;;  %v1094_v55 = vpop.xlane.xlu0 %1093 }
 0x3af   :  { %4426 = vrcp.f32 %v1260_v54 }
 0x3b0   :  { %4428 = vrcp.f32 %v1094_v55 }
 0x3b2   :  { %v1426_v56 = vpop.xlane.xlu1 %1425  ;;  %v1265_v1 = vpop.permute.xlu0 %1264 }
 0x3b3   :  { %4430 = vrcp.f32 %v1426_v56 }
 0x3b5   :  { %v4425_v57 = vpop.eup %4424 }
 0x3b6   :  { %v930_v58 = vmul.f32 %v4425_v57, %v4784_v26  ;;  %v1431_v6 = vpop.permute.xlu1 %1430 }
 0x3b8   :  { %4096 = vmatmul.mubr.msk.f32.vlgmr.msra.gmra.mrb[12].mxu1 %vm163_vm2, %v930_v58 }
 0x3b9   :  { %v4427_v59 = vpop.eup %4426  ;;  %4104 = vmatpush3.msra.mxu1 %v1099_v52  ;;  %4105 = vmatprep.mubr.msk.f32.mxu1 %vm4534_vm1, %v4533_v8 }
 0x3ba   :  { %v4429_v60 = vpop.eup %4428  ;;  %4113 = vmatprep.subr.mxu1 %v4533_v8  ;;  %v1262_v63 = vmul.f32 %v4427_v59, %v4790_v29 }
 0x3bb   :  { %v1096_v61 = vmul.f32 %v4429_v60, %v4786_v27 }
 0x3bd   :  { %v4431_v62 = vpop.eup %4430  ;;  %v1097_v0 = vadd.f32 %v1096_v61, %v930_v58  ;;  %4106 = vmatmul.mubr.msk.f32.vlgmr.msra.gmra.mrb[14].mxu1 %vm163_vm2, %v1096_v61 }
 0x3be   :  { %v1428_v2 = vmul.f32 %v4431_v62, %v4796_v32  ;;  %4114 = vmatpush3.msra.mxu1 %v1265_v1  ;;  %4115 = vmatprep.mubr.msk.f32.mxu1 %vm4534_vm1, %v4533_v8  ;;  %v1664_v62 = vld [vmem:[%s5253_s5 + $0x8] sm:$0xff]  ;;  %v1666_v1 = vld [vmem:[%s5253_s5 + $0x18] sm:$0xff] }
 0x3bf   :  { %v1263_v3 = vadd.f32 %v1262_v63, %v1097_v0  ;;  %4123 = vmatprep.subr.mxu1 %v4533_v8  ;;  %v1665_v0 = vld [vmem:[%s5253_s5 + $0x10] sm:$0xff] }
 0x3c1   :  { %v1429_v4 = vadd.f32 %v1428_v2, %v1263_v3  ;;  %4116 = vmatmul.mubr.msk.f32.vlgmr.msra.gmra.mrb[16].mxu1 %vm163_vm2, %v1262_v63  ;;  %v1757_v3 = vld [vmem:[%s5255_s7] sm:$0xff] }
 0x3c2   :  { %4124 = vmatpush3.msra.mxu1 %v1431_v6  ;;  %4125 = vmatprep.mubr.msk.f32.mxu1 %vm4534_vm1, %v4533_v8  ;;  %v1759_v6 = vld [vmem:[%s5255_s7 + $0x10] sm:$0xff] }
 0x3c3   :  { %v1521_v9 = vmul.f32 0.25, %v1429_v4  ;;  %v1758_v4 = vld [vmem:[%s5255_s7 + $0x8] sm:$0xff] }
 0x3c5   :  { %1523 = vst.msk [vmem:[#allocation5 + $0x8] sm:$0xff] %vm163_vm2, %v1521_v9  ;;  %4126 = vmatmul.mubr.msk.f32.vlgmr.msra.gmra.mrb[18].mxu1 %vm163_vm2, %v1428_v2  ;;  %v4321_v2 = vpack.c.bf16 %v1666_v1, %v1665_v0  ;;  %v4325_v9 = vpack.c.bf16 %v1758_v4, %v1757_v3 }
 0x3c7   :  { %4326 = vmatprep.subr.bf16.mxu0 %v4325_v9 }
 0x44e   :  { %v322_v10 = vpop.f32.mrb[4].mxu1 }
 0x44f   :  { %v4057_v11 = vpop.f32.mrb[5].mxu1 }
 0x452   :  { %v488_v12 = vpop.f32.mrb[6].mxu1 }
 0x453   :  { %825 = vrot.lane.b32.xlu0 %v488_v12, %s4546_s28  ;;  %v4067_v14 = vpop.f32.mrb[7].mxu1  ;;  %v1761_v12 = vld [vmem:[%s5255_s7 + $0x20] sm:$0xff] }
 0x454   :  { %v1762_v14 = vld [vmem:[%s5255_s7 + $0x28] sm:$0xff] }
 0x456   :  { %v654_v15 = vpop.f32.mrb[8].mxu1 }
 0x457   :  { %829 = vrot.lane.b32.xlu1 %v654_v15, %s5280_s29  ;;  %v4077_v16 = vpop.f32.mrb[9].mxu1  ;;  %v4333_v15 = vpack.c.bf16 %v1762_v14, %v1761_v12 }
 0x45a   :  { %v820_v17 = vpop.f32.mrb[10].mxu1 }
 0x45b   :  { %833 = vrot.lane.b32.xlu1 %v820_v17, %s5278_s30  ;;  %v4087_v18 = vpop.f32.mrb[11].mxu1 }
 0x48b   :  { %v1004_v25 = vpop.f32.mrb[12].mxu1 }
 0x48c   :  { %v4097_v26 = vpop.f32.mrb[13].mxu1 }
 0x490   :  { %v1170_v27 = vpop.f32.mrb[14].mxu1 }
 0x491   :  { %1507 = vrot.lane.b32.xlu0 %v1170_v27, %s4546_s28  ;;  %v4107_v28 = vpop.f32.mrb[15].mxu1 }
 0x494   :  { %v1336_v29 = vpop.f32.mrb[16].mxu1 }
 0x495   :  { %1511 = vrot.lane.b32.xlu0 %v1336_v29, %s5280_s29  ;;  %v4117_v30 = vpop.f32.mrb[17].mxu1 }
 0x498   :  { %v1502_v31 = vpop.f32.mrb[18].mxu1 }
 0x499   :  { %1515 = vrot.lane.b32.xlu1 %v1502_v31, %s5278_s30  ;;  %v4127_v32 = vpop.f32.mrb[19].mxu1 }
 0x49a   :  { %v1763_v32 = vld [vmem:[%s5255_s7 + $0x30] sm:$0xff] }
 0x4c5   :  { %v826_v33 = vpop.permute.xlu0 %825 }
 0x4c6   :  { %v836_v35 = vsel %vm163_vm2, %v322_v10, %v826_v33  ;;  %v1760_v10 = vld [vmem:[%s5255_s7 + $0x18] sm:$0xff] }
 0x4c7   :  { %v4329_v11 = vpack.c.bf16 %v1760_v10, %v1759_v6  ;;  %v1764_v33 = vld [vmem:[%s5255_s7 + $0x38] sm:$0xff]  ;;  %v3845_v10 = vld [vmem:[%s5259_s11] ss:$0 sm:$0xff] }
 0x4c9   :  { %v830_v34 = vpop.permute.xlu1 %829 }
 0x4ca   :  { %v838_v36 = vsel %vm837_vm3, %v836_v35, %v830_v34  ;;  %v4337_v34 = vpack.c.bf16 %v1764_v33, %v1763_v32  ;;  %v3839_v35 = vld [vmem:[%s5254_s6] ss:$0 sm:$0xff] }
 0x4cd   :  { %v834_v37 = vpop.permute.xlu1 %833 }
 0x4ce   :  { %v840_v38 = vsel %vm839_vm4, %v838_v36, %v834_v37 }
 0x4cf   :  { %4136 = vmatprep.mubr.msk.f32.mxu0 %vm78_vm0, %v840_v38 }
 0x503   :  { %v1508_v39 = vpop.permute.xlu0 %1507 }
 0x504   :  { %v1518_v41 = vsel %vm163_vm2, %v1004_v25, %v1508_v39  ;;  %v3838_v25 = vld [vmem:[%s5258_s10] ss:$0 sm:$0xff] }
 0x507   :  { %v1512_v40 = vpop.permute.xlu0 %1511 }
 0x508   :  { %v1519_v42 = vsel %vm837_vm3, %v1518_v41, %v1512_v40 }
 0x50b   :  { %v1516_v13 = vpop.permute.xlu1 %1515 }
 0x50c   :  { %v1520_v43 = vsel %vm839_vm4, %v1519_v42, %v1516_v13  ;;  %v3842_v42 = vld [vmem:[%s5256_s8] ss:$0 sm:$0xff] }
 0x50d   :  { %4137 = vmatmul.mubr.msk.f32.vlgmr.msra.gmra.mrb[14].mxu0 %vm78_vm0, %v1520_v43 }
 0x50e   :  { %4328 = vmatpush3.bf16.msra.mxu0 %v4325_v9 }
 0x50f   :  { %4330 = vmatprep.subr.bf16.mxu0 %v4329_v11 }
 0x512   :  { %4332 = vmatpush3.bf16.msra.mxu0 %v4329_v11 }
 0x513   :  { %4334 = vmatprep.subr.bf16.mxu0 %v4333_v15 }
 0x516   :  { %4336 = vmatpush3.bf16.msra.mxu0 %v4333_v15  ;;  %v3846_v15 = vld [vmem:[%s5260_s12] ss:$0 sm:$0xff] }
 0x517   :  { %4338 = vmatprep.subr.bf16.mxu0 %v4337_v34 }
 0x51a   :  { %4340 = vmatpush3.bf16.msra.mxu0 %v4337_v34 }
 0x51b   :  { %4190 = vmatprep.subr.mxu0 %v4533_v8 }
 0x5e0   :  { %v4138_v45 = vpop.f32.mrb[14].mxu0 }
 0x5e1   :  { %v1613_v46 = vadd.f32 %v4138_v45, %v3834_v44  ;;  %v1607_v47 = vpop.f32.mrb[15].mxu0 }
 0x5e2   :  { %v1608_v48 = vadd.f32 %v3834_v44, %v1607_v47 }
 0x5e3   :  { %v1617_v49 = vadd.f32 %v1613_v46, %v4670_v7 }
 0x5e4   :  { %v1616_v50 = vadd.f32 %v1608_v48, %v4663_v5  ;;  %v1663_v5 = vld [vmem:[%s5253_s5] sm:$0xff] }
 0x5e5   :  { %v1623_v51 = vsel %vm78_vm0, %v1617_v49, 0.0  ;;  %v4317_v63 = vpack.c.bf16 %v1664_v62, %v1663_v5  ;;  %v3849_v5 = vld [vmem:[%s5249_s1 + $0x30] sm:$0xff]  ;;  %v3850_v62 = vld [vmem:[%s5249_s1 + $0x38] sm:$0xff] }
 0x5e6   :  { %1624 = vadd.xlane.f32.xlu1 %v1623_v51  ;;  %v1620_v52 = vsel %vm78_vm0, %v1616_v50, 0.0 }
 0x5e7   :  { %1621 = vadd.xlane.f32.xlu0 %v1620_v52  ;;  %4318 = vmatprep.subr.bf16.mxu1 %v4317_v63 }
 0x5e8   :  { %4320 = vmatpush3.bf16.msra.mxu1 %v4317_v63  ;;  %v4345_v63 = vpack.c.bf16 %v3850_v62, %v3849_v5 }
 0x5e9   :  { %4322 = vmatprep.subr.bf16.mxu1 %v4321_v2 }
 0x5ec   :  { %4324 = vmatpush3.bf16.msra.mxu1 %v4321_v2 }
 0x673   :  { %v1625_v53 = vpop.xlane.xlu1 %1624 }
 0x674   :  { %v1628_v54 = vmul.f32 0.03125, %v1625_v53  ;;  %v1622_v55 = vpop.xlane.xlu0 %1621 }
 0x675   :  { %v1627_v56 = vmul.f32 0.03125, %v1622_v55 }
 0x676   :  { %v1630_v57 = vsub.f32 %v1617_v49, %v1628_v54 }
 0x677   :  { %v1629_v58 = vsub.f32 %v1616_v50, %v1627_v56 }
 0x678   :  { %v1632_v61 = vmul.f32 %v1630_v57, %v1630_v57 }
 0x679   :  { %v1631_v59 = vmul.f32 %v1629_v58, %v1629_v58 }
 0x67a   :  { %v1636_v7 = vsel %vm78_vm0, %v1632_v61, 0.0  ;;  %v3848_v61 = vld [vmem:[%s5249_s1 + $0x28] sm:$0xff] }
 0x67b   :  { %v1633_v60 = vsel %vm78_vm0, %v1631_v59, 0.0 }
 0x67c   :  { %1634 = vadd.xlane.f32.xlu0 %v1633_v60  ;;  %v3847_v60 = vld [vmem:[%s5249_s1 + $0x20] sm:$0xff] }
 0x680   :  { %1637 = vadd.xlane.f32.xlu0 %v1636_v7  ;;  %v4341_v7 = vpack.c.bf16 %v3848_v61, %v3847_v60 }
 0x682   :  { %4342 = vmatprep.subr.bf16.mxu1 %v4341_v7 }
 0x709   :  { %v1635_v16 = vpop.xlane.xlu0 %1634 }
 0x70a   :  { %v1639_v17 = vmul.f32 0.03125, %v1635_v16 }
 0x70c   :  { %v1641_v18 = vadd.f32 1e-05, %v1639_v17 }
 0x70d   :  { %v1638_v19 = vpop.xlane.xlu0 %1637 }
 0x70e   :  { %4432 = vrsqrt.f32 %v1641_v18  ;;  %v1640_v20 = vmul.f32 0.03125, %v1638_v19 }
 0x710   :  { %v1642_v21 = vadd.f32 1e-05, %v1640_v20  ;;  %v3852_v20 = vld [vmem:[%s5250_s2 + $0x1] ss:$0 sm:$0xff]  ;;  %s5284_s2 = smov 80  }
 0x712   :  { %4434 = vrsqrt.f32 %v1642_v21 }
 0x718   :  { %v4433_v22 = vpop.eup %4432 }
 0x719   :  { %v1645_v24 = vmul.f32 %v4433_v22, %v1629_v58 }
 0x71b   :  { %v1653_v26 = vmul.f32 %v3837_v23, %v1645_v24 }
 0x71c   :  { %v4435_v27 = vpop.eup %4434 }
 0x71d   :  { %v1646_v28 = vmul.f32 %v4435_v27, %v1630_v57  ;;  %v1661_v29 = vadd.f32 %v3838_v25, %v1653_v26 }
 0x71f   :  { %v1654_v30 = vmul.f32 %v3837_v23, %v1646_v28  ;;  %4147 = vmatprep.mubr.msk.f32.mxu1 %vm78_vm0, %v1661_v29 }
 0x721   :  { %v1662_v31 = vadd.f32 %v3838_v25, %v1654_v30 }
 0x723   :  { %4148 = vmatmul.mubr.msk.f32.vlgmr.msra.gmra.mrb[20].mxu1 %vm78_vm0, %v1662_v31 }
 0x724   :  { %4344 = vmatpush3.bf16.msra.mxu1 %v4341_v7 }
 0x725   :  { %4346 = vmatprep.subr.bf16.mxu1 %v4345_v63 }
 0x728   :  { %4348 = vmatpush3.bf16.msra.mxu1 %v4345_v63 }
 0x729   :  { %4180 = vmatprep.subr.mxu1 %v4533_v8 }
 0x7f6   :  { %v4149_v36 = vpop.f32.mrb[20].mxu1 }
 0x7f7   :  { %v1752_v37 = vadd.f32 %v4149_v36, %v3839_v35  ;;  %v1746_v38 = vpop.f32.mrb[21].mxu1 }
 0x7f8   :  { %v1747_v39 = vadd.f32 %v3839_v35, %v1746_v38 }
 0x7f9   :  { %v1756_v41 = vmax.f32 %v1752_v37, 0.0 }
 0x7fa   :  { %v1755_v40 = vmax.f32 %v1747_v39, 0.0 }
 0x7fc   :  { %4166 = vmatprep.mubr.msk.f32.mxu0 %vm1772_vm5, %v1755_v40 }
 0x7fd   :  { %4167 = vmatmul.mubr.msk.f32.vlgmr.msra.gmra.mrb[16].mxu0 %vm1772_vm5, %v1756_v41 }
 0x7fe   :  { %4192 = vmatprep.mubr.msk.f32.mxu0 %vm4534_vm1, %v4533_v8 }
 0x8d0   :  { %v4168_v13 = vpop.f32.mrb[16].mxu0 }
 0x8d1   :  { %v1851_v43 = vadd.f32 %v4168_v13, %v3842_v42  ;;  %v1845_v44 = vpop.f32.mrb[17].mxu0 }
 0x8d2   :  { %v1846_v45 = vadd.f32 %v3842_v42, %v1845_v44 }
 0x8d3   :  { %v1855_v46 = vadd.f32 %v1851_v43, %v1662_v31 }
 0x8d4   :  { %v1854_v47 = vadd.f32 %v1846_v45, %v1661_v29 }
 0x8d5   :  { %v1861_v48 = vsel %vm78_vm0, %v1855_v46, 0.0 }
 0x8d6   :  { %1862 = vadd.xlane.f32.xlu0 %v1861_v48  ;;  %v1858_v49 = vsel %vm78_vm0, %v1854_v47, 0.0 }
 0x8d7   :  { %1859 = vadd.xlane.f32.xlu1 %v1858_v49 }
 0x963   :  { %v1863_v50 = vpop.xlane.xlu0 %1862 }
 0x964   :  { %v1865_v51 = vmul.f32 0.03125, %v1863_v50  ;;  %v1860_v52 = vpop.xlane.xlu1 %1859 }
 0x965   :  { %v1864_v53 = vmul.f32 0.03125, %v1860_v52 }
 0x966   :  { %v1867_v54 = vsub.f32 %v1855_v46, %v1865_v51 }
 0x967   :  { %v1866_v55 = vsub.f32 %v1854_v47, %v1864_v53 }
 0x968   :  { %v1869_v56 = vmul.f32 %v1867_v54, %v1867_v54 }
 0x969   :  { %v1868_v57 = vmul.f32 %v1866_v55, %v1866_v55 }
 0x96a   :  { %v1873_v58 = vsel %vm78_vm0, %v1869_v56, 0.0 }
 0x96b   :  { %1874 = vadd.xlane.f32.xlu0 %v1873_v58  ;;  %v1870_v59 = vsel %vm78_vm0, %v1868_v57, 0.0 }
 0x96c   :  { %1871 = vadd.xlane.f32.xlu1 %v1870_v59 }
 0x9f8   :  { %v1875_v0 = vpop.xlane.xlu0 %1874 }
 0x9f9   :  { %v1877_v1 = vmul.f32 0.03125, %v1875_v0  ;;  %v1872_v2 = vpop.xlane.xlu1 %1871 }
 0x9fa   :  { %v1876_v3 = vmul.f32 0.03125, %v1872_v2 }
 0x9fb   :  { %v1879_v4 = vadd.f32 1e-05, %v1877_v1 }
 0x9fc   :  { %v1878_v6 = vadd.f32 1e-05, %v1876_v3 }
 0x9fd   :  { %4436 = vrsqrt.f32 %v1879_v4 }
 0x9fe   :  { %4438 = vrsqrt.f32 %v1878_v6 }
 0xa07   :  { %v4437_v9 = vpop.eup %4436 }
 0xa08   :  { %v4439_v11 = vpop.eup %4438  ;;  %v1883_v12 = vmul.f32 %v4437_v9, %v1867_v54 }
 0xa09   :  { %v1882_v14 = vmul.f32 %v4439_v11, %v1866_v55 }
 0xa0a   :  { %v1891_v16 = vmul.f32 %v3845_v10, %v1883_v12 }
 0xa0b   :  { %v1890_v17 = vmul.f32 %v3845_v10, %v1882_v14 }
 0xa0c   :  { %v4955_v19 = vadd.f32 %v3846_v15, %v1891_v16 }
 0xa0d   :  { %v4953_v18 = vadd.f32 %v3846_v15, %v1890_v17 }
 0xa0f   :  { %4177 = vmatprep.mubr.msk.f32.mxu1 %vm78_vm0, %v4953_v18 }
 0xa10   :  { %4178 = vmatmul.mubr.msk.f32.vlgmr.msra.gmra.mrb[22].mxu1 %vm78_vm0, %v4955_v19 }
 0xa11   :  { %4182 = vmatprep.mubr.msk.f32.mxu1 %vm4534_vm1, %v4533_v8 }
 0xae3   :  { %v4179_v21 = vpop.f32.mrb[22].mxu1 }
 0xae4   :  { %v1985_v22 = vpop.f32.mrb[23].mxu1  ;;  %v4980_v24 = vadd.f32 %v4179_v21, %v3852_v20 }
 0xae5   :  { %v4966_v23 = vadd.f32 %v3852_v20, %v1985_v22 }
 0xae7   :  { %2161 = vrot.lane.b32.xlu0 %v4966_v23, %s4538_s21  ;;  %1995 = vrot.lane.b32.xlu1 %v4966_v23, %s4536_s19 }
 0xaeb   :  { %2325 = vrot.lane.b32.xlu0 %v4966_v23, %s4540_s24  ;;  %2159 = vrot.lane.b32.xlu1 %v4966_v23, %s4535_s18 }
 0xaef   :  { %2491 = vrot.lane.b32.xlu0 %v4966_v23, %s4541_s25  ;;  %2327 = vrot.lane.b32.xlu1 %v4966_v23, %s5284_s2 }
 0xaf3   :  { %2842 = vrot.lane.b32.xlu0 %v4980_v24, %s4538_s21  ;;  %2493 = vrot.lane.b32.xlu1 %v4966_v23, %s5285_s17  ;;  %s5287_s21 = smov 56  }
 0xaf7   :  { %3008 = vrot.lane.b32.xlu0 %v4980_v24, %s5284_s2  ;;  %2676 = vrot.lane.b32.xlu1 %v4980_v24, %s4536_s19  ;;  %s5289_s19 = smov 48  }
 0xafb   :  { %3174 = vrot.lane.b32.xlu0 %v4980_v24, %s5285_s17  ;;  %2840 = vrot.lane.b32.xlu1 %v4980_v24, %s4535_s18  ;;  %s5288_s18 = smov 40  }
 0xaff   :  { %2083 = vrot.lane.b32.xlu0 %v4966_v23, %s5286_s20  ;;  %3006 = vrot.lane.b32.xlu1 %v4980_v24, %s4540_s24  ;;  %s5290_s24 = smov 16  }
 0xb03   :  { %3172 = vrot.lane.b32.xlu1 %v4980_v24, %s4541_s25  ;;  %s5291_s25 = smov 24  }
 0xb07   :  { %2249 = vrot.lane.b32.xlu1 %v4966_v23, %s5287_s21 }
 0xb59   :  { %v2162_v25 = vpop.permute.xlu0 %2161  ;;  %v1996_v26 = vpop.permute.xlu1 %1995 }
 0xb5a   :  { %4181 = vmatpush3.xpose.msk.msra.mxu1 %vm163_vm2, %v1996_v26  ;;  %4191 = vmatpush3.xpose.msk.msra.mxu0 %vm163_vm2, %v2162_v25 }
 0xb5b   :  { %4200 = vmatprep.subr.mxu0 %v4533_v8  ;;  %4185 = vmatprep.subr.mxu1 %v4533_v8 }
 0xb5d   :  { %v2326_v27 = vpop.permute.xlu0 %2325  ;;  %4183 = vmatmul.mubr.msk.f32.vlgmr.msra.gmra.mrb[24].mxu1 %vm163_vm2, %v4966_v23  ;;  %v2160_v28 = vpop.permute.xlu1 %2159 }
 0xb5e   :  { %4193 = vmatmul.mubr.msk.f32.vlgmr.msra.gmra.mrb[18].mxu0 %vm163_vm2, %v2160_v28  ;;  %4187 = vmatprep.mubr.msk.f32.mxu1 %vm4534_vm1, %v4533_v8 }
 0xb5f   :  { %4202 = vmatprep.mubr.msk.f32.mxu0 %vm4534_vm1, %v4533_v8 }
 0xb61   :  { %v2492_v29 = vpop.permute.xlu0 %2491  ;;  %v2328_v30 = vpop.permute.xlu1 %2327 }
 0xb62   :  { %4201 = vmatpush3.xpose.msk.msra.mxu0 %vm163_vm2, %v2328_v30 }
 0xb63   :  { %4210 = vmatprep.subr.mxu0 %v4533_v8 }
 0xb65   :  { %v2843_v31 = vpop.permute.xlu0 %2842  ;;  %4203 = vmatmul.mubr.msk.f32.vlgmr.msra.gmra.mrb[20].mxu0 %vm163_vm2, %v2326_v27  ;;  %v2494_v32 = vpop.permute.xlu1 %2493 }
 0xb66   :  { %4211 = vmatpush3.xpose.msk.msra.mxu0 %vm163_vm2, %v2494_v32  ;;  %4212 = vmatprep.mubr.msk.f32.mxu0 %vm4534_vm1, %v4533_v8 }
 0xb67   :  { %4220 = vmatprep.subr.mxu0 %v4533_v8 }
 0xb69   :  { %v3009_v33 = vpop.permute.xlu0 %3008  ;;  %4213 = vmatmul.mubr.msk.f32.vlgmr.msra.gmra.mrb[22].mxu0 %vm163_vm2, %v2492_v29  ;;  %v2677_v34 = vpop.permute.xlu1 %2676 }
 0xb6a   :  { %4221 = vmatpush3.xpose.msk.msra.mxu0 %vm163_vm2, %v2677_v34  ;;  %4222 = vmatprep.mubr.msk.f32.mxu0 %vm4534_vm1, %v4533_v8 }
 0xb6b   :  { %4230 = vmatprep.subr.mxu0 %v4533_v8 }
 0xb6d   :  { %v3175_v35 = vpop.permute.xlu0 %3174  ;;  %4223 = vmatmul.mubr.msk.f32.vlgmr.msra.gmra.mrb[24].mxu0 %vm163_vm2, %v4980_v24  ;;  %v2841_v36 = vpop.permute.xlu1 %2840 }
 0xb6e   :  { %4231 = vmatpush3.xpose.msk.msra.mxu0 %vm163_vm2, %v2843_v31  ;;  %4232 = vmatprep.mubr.msk.f32.mxu0 %vm4534_vm1, %v4533_v8 }
 0xb6f   :  { %4240 = vmatprep.subr.mxu0 %v4533_v8 }
 0xb71   :  { %v2084_v37 = vpop.permute.xlu0 %2083  ;;  %4233 = vmatmul.mubr.msk.f32.vlgmr.msra.gmra.mrb[26].mxu0 %vm163_vm2, %v2841_v36  ;;  %v3007_v38 = vpop.permute.xlu1 %3006 }
 0xb72   :  { %4186 = vmatpush3.msra.mxu1 %v2084_v37  ;;  %4241 = vmatpush3.xpose.msk.msra.mxu0 %vm163_vm2, %v3009_v33 }
 0xb73   :  { %4242 = vmatprep.mubr.msk.f32.mxu0 %vm4534_vm1, %v4533_v8  ;;  %4250 = vmatprep.subr.mxu0 %v4533_v8 }
 0xb74   :  { %4195 = vmatprep.subr.mxu1 %v4533_v8 }
 0xb75   :  { %4243 = vmatmul.mubr.msk.f32.vlgmr.msra.gmra.mrb[28].mxu0 %vm163_vm2, %v3007_v38  ;;  %v3173_v39 = vpop.permute.xlu1 %3172 }
 0xb76   :  { %4251 = vmatpush3.xpose.msk.msra.mxu0 %vm163_vm2, %v3175_v35  ;;  %4252 = vmatprep.mubr.msk.f32.mxu0 %vm4534_vm1, %v4533_v8 }
 0xb79   :  { %4253 = vmatmul.mubr.msk.f32.vlgmr.msra.gmra.mrb[30].mxu0 %vm163_vm2, %v3173_v39  ;;  %v5054_v5 = vpop.permute.xlu1 %2249 }
 0xc30   :  { %v2067_v40 = vpop.f32.mrb[24].mxu1 }
 0xc31   :  { %v4184_v41 = vpop.f32.mrb[25].mxu1  ;;  %v2233_v42 = vpop.f32.mrb[18].mxu0  ;;  %v2071_v13 = vsel %vm163_vm2, %v2067_v40, -inf }
 0xc32   :  { %2072 = vmax.xlane.f32.xlu0 %v2071_v13  ;;  %v4194_v43 = vpop.f32.mrb[19].mxu0  ;;  %v2237_v44 = vsel %vm163_vm2, %v2233_v42, -inf }
 0xc33   :  { %2238 = vmax.xlane.f32.xlu1 %v2237_v44 }
 0xc38   :  { %v2399_v45 = vpop.f32.mrb[20].mxu0 }
 0xc39   :  { %v4204_v46 = vpop.f32.mrb[21].mxu0  ;;  %v2403_v47 = vsel %vm163_vm2, %v2399_v45, -inf }
 0xc3a   :  { %2404 = vmax.xlane.f32.xlu0 %v2403_v47 }
 0xc3c   :  { %v2565_v48 = vpop.f32.mrb[22].mxu0 }
 0xc3d   :  { %v4214_v49 = vpop.f32.mrb[23].mxu0  ;;  %v2569_v50 = vsel %vm163_vm2, %v2565_v48, -inf }
 0xc3e   :  { %2570 = vmax.xlane.f32.xlu0 %v2569_v50 }
 0xc40   :  { %v2748_v51 = vpop.f32.mrb[24].mxu0 }
 0xc41   :  { %v4224_v52 = vpop.f32.mrb[25].mxu0  ;;  %v2752_v53 = vsel %vm163_vm2, %v2748_v51, -inf }
 0xc42   :  { %2753 = vmax.xlane.f32.xlu1 %v2752_v53 }
 0xc44   :  { %v2914_v54 = vpop.f32.mrb[26].mxu0 }
 0xc45   :  { %v4234_v55 = vpop.f32.mrb[27].mxu0  ;;  %v2918_v56 = vsel %vm163_vm2, %v2914_v54, -inf }
 0xc46   :  { %2919 = vmax.xlane.f32.xlu0 %v2918_v56 }
 0xc48   :  { %v3080_v57 = vpop.f32.mrb[28].mxu0 }
 0xc49   :  { %v4244_v58 = vpop.f32.mrb[29].mxu0  ;;  %v3084_v59 = vsel %vm163_vm2, %v3080_v57, -inf }
 0xc4a   :  { %3085 = vmax.xlane.f32.xlu1 %v3084_v59 }
 0xc4c   :  { %v3246_v60 = vpop.f32.mrb[30].mxu0 }
 0xc4d   :  { %v4254_v61 = vpop.f32.mrb[31].mxu0  ;;  %v3250_v7 = vsel %vm163_vm2, %v3246_v60, -inf }
 0xc4e   :  { %3251 = vmax.xlane.f32.xlu0 %v3250_v7 }
 0xc5b   :  { %2581 = vrot.lane.b32.xlu1 %v4966_v23, %s5288_s18 }
 0xc64   :  { %2415 = vrot.lane.b32.xlu0 %v4966_v23, %s5289_s19 }
 0xcbf   :  { %v2073_v62 = vpop.xlane.xlu0 %2072 }
 0xcc0   :  { %v2074_v63 = vsub.f32 %v2067_v40, %v2073_v62  ;;  %v2239_v0 = vpop.xlane.xlu1 %2238 }
 0xcc1   :  { %v2240_v1 = vsub.f32 %v2233_v42, %v2239_v0 }
 0xcc2   :  { %v2075_v2 = vmul.f32 1.442695, %v2074_v63 }
 0xcc3   :  { %v2241_v3 = vmul.f32 1.442695, %v2240_v1 }
 0xcc4   :  { %4440 = vpow2.f32 %v2075_v2 }
 0xcc5   :  { %4442 = vpow2.f32 %v2241_v3 }
 0xcc7   :  { %v2405_v4 = vpop.xlane.xlu0 %2404 }
 0xcc8   :  { %v2406_v6 = vsub.f32 %v2399_v45, %v2405_v4 }
 0xcca   :  { %v2407_v9 = vmul.f32 1.442695, %v2406_v6 }
 0xccb   :  { %v2571_v10 = vpop.xlane.xlu0 %2570 }
 0xccc   :  { %4444 = vpow2.f32 %v2407_v9  ;;  %v2572_v11 = vsub.f32 %v2565_v48, %v2571_v10 }
 0xcce   :  { %v4441_v12 = vpop.eup %4440  ;;  %v2573_v14 = vmul.f32 1.442695, %v2572_v11 }
 0xccf   :  { %v4443_v15 = vpop.eup %4442  ;;  %v2077_v16 = vsel %vm163_vm2, %v4441_v12, 0.0  ;;  %v2754_v25 = vpop.xlane.xlu1 %2753 }
 0xcd0   :  { %4446 = vpow2.f32 %v2573_v14  ;;  %2078 = vadd.xlane.f32.xlu1 %v2077_v16  ;;  %v2243_v17 = vsel %vm163_vm2, %v4443_v15, 0.0  ;;  %v2755_v26 = vsub.f32 %v2748_v51, %v2754_v25 }
 0xcd1   :  { %2244 = vadd.xlane.f32.xlu0 %v2243_v17 }
 0xcd2   :  { %v2756_v30 = vmul.f32 1.442695, %v2755_v26 }
 0xcd3   :  { %v2920_v27 = vpop.xlane.xlu0 %2919 }
 0xcd4   :  { %v2921_v29 = vsub.f32 %v2914_v54, %v2920_v27  ;;  %4448 = vpow2.f32 %v2756_v30  ;;  %v3880_v30 = vld [vmem:[%s5251_s3 + $0x28] sm:$0xff] }
 0xcd6   :  { %v4445_v20 = vpop.eup %4444  ;;  %v2922_v33 = vmul.f32 1.442695, %v2921_v29 }
 0xcd7   :  { %v2409_v21 = vsel %vm163_vm2, %v4445_v20, 0.0  ;;  %v3086_v28 = vpop.xlane.xlu1 %3085 }
 0xcd8   :  { %2410 = vadd.xlane.f32.xlu1 %v2409_v21  ;;  %v3087_v31 = vsub.f32 %v3080_v57, %v3086_v28  ;;  %4450 = vpow2.f32 %v2922_v33  ;;  %v3882_v33 = vld [vmem:[%s5251_s3 + $0x38] sm:$0xff] }
 0xcda   :  { %v5059_v22 = vpop.eup %4446  ;;  %v3088_v34 = vmul.f32 1.442695, %v3087_v31 }
 0xcdb   :  { %v2575_v23 = vsel %vm163_vm2, %v5059_v22, 0.0  ;;  %v3252_v32 = vpop.xlane.xlu0 %3251  ;;  %v2582_v44 = vpop.permute.xlu1 %2581 }
 0xcdc   :  { %2576 = vadd.xlane.f32.xlu0 %v2575_v23  ;;  %v3253_v35 = vsub.f32 %v3246_v60, %v3252_v32  ;;  %4452 = vpow2.f32 %v3088_v34  ;;  %v3881_v32 = vld [vmem:[%s5251_s3 + $0x30] sm:$0xff] }
 0xcdd   :  { %v4353_v34 = vpack.c.bf16 %v3882_v33, %v3881_v32  ;;  %v3889_v32 = vld [vmem:[%s5257_s9 + $0x1] ss:$0 sm:$0xff] }
 0xcde   :  { %v3254_v36 = vmul.f32 1.442695, %v3253_v35  ;;  %v5067_v37 = vpop.eup %4448 }
 0xcdf   :  { %v2758_v39 = vsel %vm163_vm2, %v5067_v37, 0.0  ;;  %v2416_v45 = vpop.permute.xlu0 %2415 }
 0xce0   :  { %4454 = vpow2.f32 %v3254_v36 }
 0xce2   :  { %v5069_v38 = vpop.eup %4450 }
 0xce3   :  { %v2924_v41 = vsel %vm163_vm2, %v5069_v38, 0.0 }
 0xce6   :  { %v5073_v40 = vpop.eup %4452 }
 0xce7   :  { %v3090_v42 = vsel %vm163_vm2, %v5073_v40, 0.0 }
 0xce9   :  { %2930 = vrot.lane.b32.xlu1 %v4980_v24, %s5287_s21 }
 0xcea   :  { %v5079_v13 = vpop.eup %4454 }
 0xceb   :  { %v3256_v43 = vsel %vm163_vm2, %v5079_v13, 0.0 }
 0xcf2   :  { %2764 = vrot.lane.b32.xlu0 %v4980_v24, %s5286_s20 }
 0xd0d   :  { %2759 = vadd.xlane.f32.xlu1 %v2758_v39 }
 0xd11   :  { %2925 = vadd.xlane.f32.xlu0 %v2924_v41  ;;  %3091 = vadd.xlane.f32.xlu1 %v3090_v42 }
 0xd15   :  { %3257 = vadd.xlane.f32.xlu1 %v3256_v43 }
 0xd26   :  { %3262 = vrot.lane.b32.xlu1 %v4980_v24, %s5288_s18 }
 0xd27   :  { %3096 = vrot.lane.b32.xlu0 %v4980_v24, %s5289_s19 }
 0xd5d   :  { %v2079_v46 = vpop.xlane.xlu1 %2078 }
 0xd5e   :  { %4456 = vrcp.f32 %v2079_v46  ;;  %v2245_v47 = vpop.xlane.xlu0 %2244 }
 0xd5f   :  { %4458 = vrcp.f32 %v2245_v47 }
 0xd65   :  { %v2411_v48 = vpop.xlane.xlu1 %2410 }
 0xd66   :  { %4460 = vrcp.f32 %v2411_v48 }
 0xd68   :  { %v4457_v49 = vpop.eup %4456 }
 0xd69   :  { %v2081_v50 = vmul.f32 %v4457_v49, %v4441_v12  ;;  %v2577_v51 = vpop.xlane.xlu0 %2576  ;;  %v4459_v52 = vpop.eup %4458 }
 0xd6a   :  { %4462 = vrcp.f32 %v2577_v51  ;;  %v2247_v24 = vmul.f32 %v4459_v52, %v4443_v15  ;;  %v2931_v7 = vpop.permute.xlu1 %2930 }
 0xd6b   :  { %4188 = vmatmul.mubr.msk.f32.vlgmr.msra.gmra.mrb[26].mxu1 %vm163_vm2, %v2081_v50 }
 0xd6c   :  { %4196 = vmatpush3.msra.mxu1 %v5054_v5  ;;  %4197 = vmatprep.mubr.msk.f32.mxu1 %vm4534_vm1, %v4533_v8  ;;  %v2248_v55 = vadd.f32 %v2247_v24, %v2081_v50 }
 0xd6d   :  { %4205 = vmatprep.subr.mxu1 %v4533_v8  ;;  %v2765_v60 = vpop.permute.xlu0 %2764 }
 0xd6f   :  { %4198 = vmatmul.mubr.msk.f32.vlgmr.msra.gmra.mrb[28].mxu1 %vm163_vm2, %v2247_v24 }
 0xd70   :  { %v4461_v53 = vpop.eup %4460  ;;  %4206 = vmatpush3.msra.mxu1 %v2416_v45  ;;  %4207 = vmatprep.mubr.msk.f32.mxu1 %vm4534_vm1, %v4533_v8 }
 0xd71   :  { %v2413_v54 = vmul.f32 %v4461_v53, %v4445_v20  ;;  %4215 = vmatprep.subr.mxu1 %v4533_v8  ;;  %v3884_v53 = vld [vmem:[%s5252_s4 + $0x1] ss:$0 sm:$0xff] }
 0xd73   :  { %4208 = vmatmul.mubr.msk.f32.vlgmr.msra.gmra.mrb[30].mxu1 %vm163_vm2, %v2413_v54  ;;  %v2414_v57 = vadd.f32 %v2413_v54, %v2248_v55 }
 0xd74   :  { %v4463_v56 = vpop.eup %4462  ;;  %4216 = vmatpush3.msra.mxu1 %v2582_v44  ;;  %4217 = vmatprep.mubr.msk.f32.mxu1 %vm4534_vm1, %v4533_v8 }
 0xd75   :  { %v2579_v58 = vmul.f32 %v4463_v56, %v5059_v22  ;;  %4225 = vmatprep.subr.mxu1 %v4533_v8 }
 0xd77   :  { %v2580_v59 = vadd.f32 %v2579_v58, %v2414_v57  ;;  %4218 = vmatmul.mubr.msk.f32.vlgmr.msra.gmra.mrb[32].mxu1 %vm163_vm2, %v2579_v58 }
 0xd78   :  { %4226 = vmatpush3.msra.mxu1 %v2765_v60  ;;  %4227 = vmatprep.mubr.msk.f32.mxu1 %vm4534_vm1, %v4533_v8 }
 0xd79   :  { %v2672_v61 = vmul.f32 0.25, %v2580_v59  ;;  %4235 = vmatprep.subr.mxu1 %v4533_v8 }
 0xd7b   :  { %2674 = vst.msk [vmem:[#allocation5 + $0x10] sm:$0xff] %vm163_vm2, %v2672_v61 }
 0xd9a   :  { %v2760_v5 = vpop.xlane.xlu1 %2759 }
 0xd9b   :  { %4464 = vrcp.f32 %v2760_v5 }
 0xd9e   :  { %v2926_v62 = vpop.xlane.xlu0 %2925  ;;  %v3092_v63 = vpop.xlane.xlu1 %3091 }
 0xd9f   :  { %4466 = vrcp.f32 %v2926_v62 }
 0xda0   :  { %4468 = vrcp.f32 %v3092_v63 }
 0xda2   :  { %v3258_v0 = vpop.xlane.xlu1 %3257  ;;  %v3097_v11 = vpop.permute.xlu0 %3096 }
 0xda3   :  { %4470 = vrcp.f32 %v3258_v0 }
 0xda5   :  { %v4465_v1 = vpop.eup %4464 }
 0xda6   :  { %v2762_v2 = vmul.f32 %v4465_v1, %v5067_v37  ;;  %v3263_v17 = vpop.permute.xlu1 %3262 }
 0xda8   :  { %4228 = vmatmul.mubr.msk.f32.vlgmr.msra.gmra.mrb[34].mxu1 %vm163_vm2, %v2762_v2 }
 0xda9   :  { %v4467_v3 = vpop.eup %4466  ;;  %4236 = vmatpush3.msra.mxu1 %v2931_v7  ;;  %4237 = vmatprep.mubr.msk.f32.mxu1 %vm4534_vm1, %v4533_v8 }
 0xdaa   :  { %v4469_v4 = vpop.eup %4468  ;;  %v2928_v6 = vmul.f32 %v4467_v3, %v5069_v38  ;;  %4245 = vmatprep.subr.mxu1 %v4533_v8 }
 0xdab   :  { %v3094_v10 = vmul.f32 %v4469_v4, %v5073_v40 }
 0xdac   :  { %v2929_v9 = vadd.f32 %v2928_v6, %v2762_v2  ;;  %4238 = vmatmul.mubr.msk.f32.vlgmr.msra.gmra.mrb[36].mxu1 %vm163_vm2, %v2928_v6  ;;  %v3892_v6 = vld [vmem:[%s5253_s5 + $0x28] sm:$0xff] }
 0xdad   :  { %v4471_v12 = vpop.eup %4470  ;;  %4246 = vmatpush3.msra.mxu1 %v3097_v11  ;;  %4247 = vmatprep.mubr.msk.f32.mxu1 %vm4534_vm1, %v4533_v8  ;;  %v3894_v11 = vld [vmem:[%s5253_s5 + $0x38] sm:$0xff] }
 0xdae   :  { %v3095_v14 = vadd.f32 %v3094_v10, %v2929_v9  ;;  %v3260_v15 = vmul.f32 %v4471_v12, %v5079_v13  ;;  %4255 = vmatprep.subr.mxu1 %v4533_v8 }
 0xdb0   :  { %v3261_v16 = vadd.f32 %v3260_v15, %v3095_v14  ;;  %4248 = vmatmul.mubr.msk.f32.vlgmr.msra.gmra.mrb[38].mxu1 %vm163_vm2, %v3094_v10  ;;  %v3893_v10 = vld [vmem:[%s5253_s5 + $0x30] sm:$0xff]  ;;  %v3899_v14 = vld [vmem:[%s5255_s7 + $0x40] sm:$0xff] }
 0xdb1   :  { %4256 = vmatpush3.msra.mxu1 %v3263_v17  ;;  %4257 = vmatprep.mubr.msk.f32.mxu1 %vm4534_vm1, %v4533_v8  ;;  %v3879_v8 = vld [vmem:[%s5251_s3 + $0x20] sm:$0xff]  ;;  %v4361_v12 = vpack.c.bf16 %v3894_v11, %v3893_v10 }
 0xdb2   :  { %v3353_v20 = vmul.f32 0.25, %v3261_v16  ;;  %v4349_v31 = vpack.c.bf16 %v3880_v30, %v3879_v8  ;;  %v3901_v16 = vld [vmem:[%s5255_s7 + $0x50] sm:$0xff]  ;;  %v3913_v10 = vld [vmem:[%s5259_s11 + $0x1] ss:$0 sm:$0xff]  ;;  %s4549_s11 = smov [#allocation5]  }
 0xdb4   :  { %3355 = vst.msk [vmem:[#allocation5 + $0x18] sm:$0xff] %vm163_vm2, %v3353_v20  ;;  %4258 = vmatmul.mubr.msk.f32.vlgmr.msra.gmra.mrb[40].mxu1 %vm163_vm2, %v3260_v15  ;;  %4350 = vmatprep.subr.bf16.mxu0 %v4349_v31  ;;  %v3900_v15 = vld [vmem:[%s5255_s7 + $0x48] sm:$0xff]  ;;  %v3902_v20 = vld [vmem:[%s5255_s7 + $0x58] sm:$0xff] }
 0xdb5   :  { %4352 = vmatpush3.bf16.msra.mxu0 %v4349_v31  ;;  %v4365_v17 = vpack.c.bf16 %v3900_v15, %v3899_v14  ;;  %v3914_v14 = vld [vmem:[%s5260_s12 + $0x1] ss:$0 sm:$0xff]  ;;  %s3793_s12 = sshll.u32 %s4549_s11, 4  ;;  %s3794_s12 = int_to_ptr.vmem [resolvable:$true] %s3793_s12 }
 0xdb6   :  { %4354 = vmatprep.subr.bf16.mxu0 %v4353_v34  ;;  %s4506_s27 = scalar_lea.vmem %s3794_s12, 512  ;;  %p4511_p9 = scmp.lt.s32.totalorder %s3794_s12, %s3794_s12 }
 0xdb7   :  { %p4507_p8 = scmp.ne.s32.totalorder %s3794_s12, %s4506_s27  ;;  %p4512_p10 = scmp.lt.s32.totalorder %s4506_s27, %s4506_s27 }
 0xdb9   :  { %4356 = vmatpush3.bf16.msra.mxu0 %v4353_v34  ;;  %v3890_v34 = vld [vmem:[%s5258_s10 + $0x1] ss:$0 sm:$0xff]  ;;  %p4513_p11 = por %p4512_p10, %p4511_p9 }
 0xdba   :  { %4366 = vmatprep.subr.bf16.mxu0 %v4365_v17 }
 0xdbb   :  { %p4514_p12 = pnand %p4513_p11, %p4507_p8 }
 0xe3e   :  { %v2155_v21 = vpop.f32.mrb[26].mxu1 }
 0xe3f   :  { %v4189_v22 = vpop.f32.mrb[27].mxu1 }
 0xe40   :  { %v3903_v22 = vld [vmem:[%s5255_s7 + $0x60] sm:$0xff] }
 0xe42   :  { %v2321_v23 = vpop.f32.mrb[28].mxu1 }
 0xe43   :  { %2658 = vrot.lane.b32.xlu0 %v2321_v23, %s4546_s28  ;;  %v4199_v25 = vpop.f32.mrb[29].mxu1  ;;  %v3904_v23 = vld [vmem:[%s5255_s7 + $0x68] sm:$0xff] }
 0xe44   :  { %v4373_v25 = vpack.c.bf16 %v3904_v23, %v3903_v22 }
 0xe46   :  { %v2487_v26 = vpop.f32.mrb[30].mxu1 }
 0xe47   :  { %2662 = vrot.lane.b32.xlu1 %v2487_v26, %s5290_s24  ;;  %v4209_v27 = vpop.f32.mrb[31].mxu1 }
 0xe4a   :  { %v2653_v28 = vpop.f32.mrb[32].mxu1 }
 0xe4b   :  { %2666 = vrot.lane.b32.xlu1 %v2653_v28, %s5291_s25  ;;  %v4219_v29 = vpop.f32.mrb[33].mxu1 }
 0xe7b   :  { %v2836_v35 = vpop.f32.mrb[34].mxu1 }
 0xe7c   :  { %v4229_v36 = vpop.f32.mrb[35].mxu1 }
 0xe7f   :  { %v3002_v37 = vpop.f32.mrb[36].mxu1 }
 0xe80   :  { %3339 = vrot.lane.b32.xlu0 %v3002_v37, %s4546_s28  ;;  %v4239_v38 = vpop.f32.mrb[37].mxu1 }
 0xe83   :  { %v3168_v39 = vpop.f32.mrb[38].mxu1 }
 0xe84   :  { %3343 = vrot.lane.b32.xlu0 %v3168_v39, %s5290_s24  ;;  %v4249_v40 = vpop.f32.mrb[39].mxu1 }
 0xe87   :  { %v3334_v41 = vpop.f32.mrb[40].mxu1 }
 0xe88   :  { %3347 = vrot.lane.b32.xlu1 %v3334_v41, %s5291_s25  ;;  %v4259_v42 = vpop.f32.mrb[41].mxu1  ;;  %v3905_v41 = vld [vmem:[%s5255_s7 + $0x70] sm:$0xff] }
 0xe89   :  { %v3906_v42 = vld [vmem:[%s5255_s7 + $0x78] sm:$0xff] }
 0xeb5   :  { %v2659_v13 = vpop.permute.xlu0 %2658 }
 0xeb6   :  { %v2669_v44 = vsel %vm163_vm2, %v2155_v21, %v2659_v13  ;;  %v4369_v21 = vpack.c.bf16 %v3902_v20, %v3901_v16  ;;  %v4377_v13 = vpack.c.bf16 %v3906_v42, %v3905_v41 }
 0xeb9   :  { %v2663_v43 = vpop.permute.xlu1 %2662 }
 0xeba   :  { %v2670_v45 = vsel %vm837_vm3, %v2669_v44, %v2663_v43  ;;  %v3896_v43 = vld [vmem:[%s5254_s6 + $0x1] ss:$0 sm:$0xff] }
 0xebd   :  { %v2667_v46 = vpop.permute.xlu1 %2666 }
 0xebe   :  { %v2671_v47 = vsel %vm839_vm4, %v2670_v45, %v2667_v46 }
 0xebf   :  { %4268 = vmatprep.mubr.msk.f32.mxu0 %vm78_vm0, %v2671_v47 }
 0xef2   :  { %v3340_v48 = vpop.permute.xlu0 %3339 }
 0xef3   :  { %v3350_v50 = vsel %vm163_vm2, %v2836_v35, %v3340_v48 }
 0xef6   :  { %v3344_v49 = vpop.permute.xlu0 %3343 }
 0xef7   :  { %v3351_v51 = vsel %vm837_vm3, %v3350_v50, %v3344_v49  ;;  %v3908_v50 = vld [vmem:[%s5256_s8 + $0x1] ss:$0 sm:$0xff] }
 0xefa   :  { %v3348_v52 = vpop.permute.xlu1 %3347 }
 0xefb   :  { %v3352_v24 = vsel %vm839_vm4, %v3351_v51, %v3348_v52 }
 0xefc   :  { %4269 = vmatmul.mubr.msk.f32.vlgmr.msra.gmra.mrb[32].mxu0 %vm78_vm0, %v3352_v24 }
 0xefd   :  { %4368 = vmatpush3.bf16.msra.mxu0 %v4365_v17 }
 0xefe   :  { %4370 = vmatprep.subr.bf16.mxu0 %v4369_v21 }
 0xf01   :  { %4372 = vmatpush3.bf16.msra.mxu0 %v4369_v21 }
 0xf02   :  { %4374 = vmatprep.subr.bf16.mxu0 %v4373_v25 }
 0xf05   :  { %4376 = vmatpush3.bf16.msra.mxu0 %v4373_v25 }
 0xf06   :  { %4378 = vmatprep.subr.bf16.mxu0 %v4377_v13 }
 0xf09   :  { %4380 = vmatpush3.bf16.msra.mxu0 %v4377_v13 }
 0xfcf   :  { %v4270_v54 = vpop.f32.mrb[32].mxu0 }
 0xfd0   :  { %v3447_v55 = vadd.f32 %v4270_v54, %v3884_v53  ;;  %v3441_v56 = vpop.f32.mrb[33].mxu0 }
 0xfd1   :  { %v3442_v57 = vadd.f32 %v3884_v53, %v3441_v56 }
 0xfd2   :  { %v3451_v58 = vadd.f32 %v3447_v55, %v4955_v19 }
 0xfd3   :  { %v3450_v59 = vadd.f32 %v3442_v57, %v4953_v18  ;;  %v3891_v18 = vld [vmem:[%s5253_s5 + $0x20] sm:$0xff] }
 0xfd4   :  { %v3459_v60 = vsel %vm78_vm0, %v3451_v58, 0.0  ;;  %v4357_v9 = vpack.c.bf16 %v3892_v6, %v3891_v18 }
 0xfd5   :  { %3460 = vadd.xlane.f32.xlu1 %v3459_v60  ;;  %v3456_v61 = vsel %vm78_vm0, %v3450_v59, 0.0 }
 0xfd6   :  { %3457 = vadd.xlane.f32.xlu0 %v3456_v61  ;;  %4358 = vmatprep.subr.bf16.mxu1 %v4357_v9 }
 0xfd7   :  { %4360 = vmatpush3.bf16.msra.mxu1 %v4357_v9 }
 0xfd8   :  { %4362 = vmatprep.subr.bf16.mxu1 %v4361_v12 }
 0xfdb   :  { %4364 = vmatpush3.bf16.msra.mxu1 %v4361_v12 }
0x1062   :  { %v3461_v7 = vpop.xlane.xlu1 %3460 }
0x1063   :  { %v3463_v5 = vmul.f32 0.03125, %v3461_v7  ;;  %v3458_v62 = vpop.xlane.xlu0 %3457 }
0x1064   :  { %v3462_v63 = vmul.f32 0.03125, %v3458_v62 }
0x1065   :  { %v3465_v0 = vsub.f32 %v3451_v58, %v3463_v5 }
0x1066   :  { %v3464_v1 = vsub.f32 %v3450_v59, %v3462_v63 }
0x1067   :  { %v3467_v4 = vmul.f32 %v3465_v0, %v3465_v0 }
0x1068   :  { %v3466_v2 = vmul.f32 %v3464_v1, %v3464_v1 }
0x1069   :  { %v3471_v19 = vsel %vm78_vm0, %v3467_v4, 0.0 }
0x106a   :  { %v3468_v3 = vsel %vm78_vm0, %v3466_v2, 0.0 }
0x106b   :  { %3469 = vadd.xlane.f32.xlu0 %v3468_v3 }
0x106f   :  { %3472 = vadd.xlane.f32.xlu0 %v3471_v19 }
0x10f8   :  { %v3470_v26 = vpop.xlane.xlu0 %3469 }
0x10f9   :  { %v3474_v27 = vmul.f32 0.03125, %v3470_v26 }
0x10fb   :  { %v3476_v28 = vadd.f32 1e-05, %v3474_v27 }
0x10fc   :  { %v3473_v29 = vpop.xlane.xlu0 %3472 }
0x10fd   :  { %4472 = vrsqrt.f32 %v3476_v28  ;;  %v3475_v8 = vmul.f32 0.03125, %v3473_v29 }
0x10ff   :  { %v3477_v30 = vadd.f32 1e-05, %v3475_v8 }
0x1101   :  { %4474 = vrsqrt.f32 %v3477_v30 }
0x1107   :  { %v4473_v31 = vpop.eup %4472 }
0x1108   :  { %v3480_v33 = vmul.f32 %v4473_v31, %v3464_v1 }
0x110a   :  { %v3488_v35 = vmul.f32 %v3889_v32, %v3480_v33 }
0x110b   :  { %v4475_v36 = vpop.eup %4474 }
0x110c   :  { %v3481_v37 = vmul.f32 %v4475_v36, %v3465_v0  ;;  %v3496_v38 = vadd.f32 %v3890_v34, %v3488_v35 }
0x110e   :  { %v3489_v39 = vmul.f32 %v3889_v32, %v3481_v37  ;;  %4279 = vmatprep.mubr.msk.f32.mxu1 %vm78_vm0, %v3496_v38 }
0x1110   :  { %v3497_v40 = vadd.f32 %v3890_v34, %v3489_v39 }
0x1112   :  { %4280 = vmatmul.mubr.msk.f32.vlgmr.msra.gmra.mrb[42].mxu1 %vm78_vm0, %v3497_v40 }
0x11e5   :  { %v4281_v44 = vpop.f32.mrb[42].mxu1 }
0x11e6   :  { %v3589_v45 = vadd.f32 %v4281_v44, %v3896_v43  ;;  %v3583_v46 = vpop.f32.mrb[43].mxu1 }
0x11e7   :  { %v3584_v47 = vadd.f32 %v3896_v43, %v3583_v46 }
0x11e8   :  { %v3593_v49 = vmax.f32 %v3589_v45, 0.0 }
0x11e9   :  { %v3592_v48 = vmax.f32 %v3584_v47, 0.0 }
0x11eb   :  { %4298 = vmatprep.mubr.msk.f32.mxu0 %vm1772_vm5, %v3592_v48 }
0x11ec   :  { %4299 = vmatmul.mubr.msk.f32.vlgmr.msra.gmra.mrb[34].mxu0 %vm1772_vm5, %v3593_v49 }
0x12bf   :  { %v4300_v51 = vpop.f32.mrb[34].mxu0 }
0x12c0   :  { %v3689_v52 = vadd.f32 %v4300_v51, %v3908_v50  ;;  %v3683_v24 = vpop.f32.mrb[35].mxu0 }
0x12c1   :  { %v3684_v53 = vadd.f32 %v3908_v50, %v3683_v24 }
0x12c2   :  { %v3693_v54 = vadd.f32 %v3689_v52, %v3497_v40 }
0x12c3   :  { %v3692_v55 = vadd.f32 %v3684_v53, %v3496_v38 }
0x12c4   :  { %v3701_v56 = vsel %vm78_vm0, %v3693_v54, 0.0 }
0x12c5   :  { %3702 = vadd.xlane.f32.xlu0 %v3701_v56  ;;  %v3698_v57 = vsel %vm78_vm0, %v3692_v55, 0.0 }
0x12c6   :  { %3699 = vadd.xlane.f32.xlu1 %v3698_v57 }
0x1352   :  { %v3703_v58 = vpop.xlane.xlu0 %3702 }
0x1353   :  { %v3705_v59 = vmul.f32 0.03125, %v3703_v58  ;;  %v3700_v60 = vpop.xlane.xlu1 %3699 }
0x1354   :  { %v3704_v61 = vmul.f32 0.03125, %v3700_v60 }
0x1355   :  { %v3707_v7 = vsub.f32 %v3693_v54, %v3705_v59 }
0x1356   :  { %v3706_v5 = vsub.f32 %v3692_v55, %v3704_v61 }
0x1357   :  { %v3709_v62 = vmul.f32 %v3707_v7, %v3707_v7 }
0x1358   :  { %v3708_v63 = vmul.f32 %v3706_v5, %v3706_v5 }
0x1359   :  { %v3713_v0 = vsel %vm78_vm0, %v3709_v62, 0.0 }
0x135a   :  { %3714 = vadd.xlane.f32.xlu0 %v3713_v0  ;;  %v3710_v1 = vsel %vm78_vm0, %v3708_v63, 0.0 }
0x135b   :  { %3711 = vadd.xlane.f32.xlu1 %v3710_v1 }
0x13e7   :  { %v3715_v2 = vpop.xlane.xlu0 %3714 }
0x13e8   :  { %v3717_v3 = vmul.f32 0.03125, %v3715_v2  ;;  %v3712_v4 = vpop.xlane.xlu1 %3711 }
0x13e9   :  { %v3716_v19 = vmul.f32 0.03125, %v3712_v4 }
0x13ea   :  { %v3719_v18 = vadd.f32 1e-05, %v3717_v3 }
0x13eb   :  { %v3718_v6 = vadd.f32 1e-05, %v3716_v19 }
0x13ec   :  { %4476 = vrsqrt.f32 %v3719_v18 }
0x13ed   :  { %4478 = vrsqrt.f32 %v3718_v6 }
0x13f6   :  { %v4477_v9 = vpop.eup %4476 }
0x13f7   :  { %v4479_v11 = vpop.eup %4478  ;;  %v3723_v12 = vmul.f32 %v4477_v9, %v3707_v7 }
0x13f8   :  { %v3722_v15 = vmul.f32 %v4479_v11, %v3706_v5 }
0x13f9   :  { %v3731_v16 = vmul.f32 %v3913_v10, %v3723_v12 }
0x13fa   :  { %v3730_v17 = vmul.f32 %v3913_v10, %v3722_v15 }
0x13fb   :  { %v3739_v20 = vadd.f32 %v3914_v14, %v3731_v16 }
0x13fc   :  { %v3738_v21 = vadd.f32 %v3914_v14, %v3730_v17 }
0x13fd   :  { %v3745_v22 = vsel %vm78_vm0, %v3739_v20, 0.0 }
0x13fe   :  { %3746 = vadd.xlane.f32.xlu0 %v3745_v22  ;;  %v3742_v23 = vsel %vm78_vm0, %v3738_v21, 0.0 }
0x13ff   :  { %3743 = vadd.xlane.f32.xlu1 %v3742_v23 }
0x148b   :  { %v3747_v25 = vpop.xlane.xlu0 %3746 }
0x148c   :  { %v3749_v26 = vmul.f32 0.03125, %v3747_v25  ;;  %v3744_v27 = vpop.xlane.xlu1 %3743 }
0x148d   :  { %v3748_v28 = vmul.f32 0.03125, %v3744_v27 }
0x148e   :  { %v3751_v29 = vsub.f32 %v3739_v20, %v3749_v26 }
0x148f   :  { %v3750_v8 = vsub.f32 %v3738_v21, %v3748_v28 }
0x1490   :  { %v3753_v30 = vmul.f32 %v3751_v29, %v3751_v29 }
0x1491   :  { %v3752_v31 = vmul.f32 %v3750_v8, %v3750_v8 }
0x1492   :  { %v3757_v32 = vsel %vm78_vm0, %v3753_v30, 0.0 }
0x1493   :  { %3758 = vadd.xlane.f32.xlu0 %v3757_v32  ;;  %v3754_v33 = vsel %vm78_vm0, %v3752_v31, 0.0 }
0x1494   :  { %3755 = vadd.xlane.f32.xlu1 %v3754_v33 }
0x1495   :  { %4517 = shalt.err (!%p4514_p12)
}
0x1496   :  { %s4518_s1 = scalar_lea.hbm %s5264_s16, 512 }
0x1497   :  { %p4519_p13 = scmp.ne.s32.totalorder %s5264_s16, %s4518_s1  ;;  %p4522_p0 = scmp.lt.u32.totalorder %s4518_s1, %s5264_s16 }
0x1499   :  { %p4524_p1 = pnand %p4522_p0, %p4519_p13 }
0x149b   :  { %4527 = shalt.err (!%p4524_p1)
}
0x149c   :  { %s4550_s0 = smov 128   ;;  %v3915_v41 = vld [vmem:[%s5261_s13] ss:$0 sm:$0xff] }
0x149d   :  { %3799 = dma.vmem_to_hbm [thread:$0]  %s3794_s12, 512, %s5264_s16, [#allocation4], %s4550_s0, %s4550_s0, %s4546_s28   ;;  %v3916_v43 = vld [vmem:[#allocation2] ss:$0 sm:$0xff] }
0x1520   :  { %v3759_v34 = vpop.xlane.xlu0 %3758 }
0x1521   :  { %v3761_v35 = vmul.f32 0.03125, %v3759_v34  ;;  %v3756_v36 = vpop.xlane.xlu1 %3755 }
0x1522   :  { %v3760_v37 = vmul.f32 0.03125, %v3756_v36 }
0x1523   :  { %v3763_v38 = vadd.f32 1e-05, %v3761_v35 }
0x1524   :  { %v3762_v39 = vadd.f32 1e-05, %v3760_v37 }
0x1525   :  { %4480 = vrsqrt.f32 %v3763_v38 }
0x1526   :  { %4482 = vrsqrt.f32 %v3762_v39 }
0x152f   :  { %v4481_v40 = vpop.eup %4480 }
0x1530   :  { %v4483_v42 = vpop.eup %4482  ;;  %v3767_v13 = vmul.f32 %v4481_v40, %v3751_v29 }
0x1531   :  { %v3766_v44 = vmul.f32 %v4483_v42, %v3750_v8 }
0x1532   :  { %v3775_v45 = vmul.f32 %v3915_v41, %v3767_v13 }
0x1533   :  { %v3774_v46 = vmul.f32 %v3915_v41, %v3766_v44 }
0x1534   :  { %v3783_v47 = vadd.f32 %v3916_v43, %v3775_v45 }
0x1535   :  { %v3782_v48 = vadd.f32 %v3916_v43, %v3774_v46 }
0x1536   :  { %3785 = vst.msk [vmem:[%s5263_s15 + $0x8] sm:$0xff] %vm78_vm0, %v3783_v47 }
0x1537   :  { %3784 = vst.msk [vmem:[%s5263_s15] sm:$0xff] %vm78_vm0, %v3782_v48 }
0x1538   :  { %4530 = dma.done.wait [#allocation4], 512  }
0x1539   :  { %4531 = vsyncadd [#allocation4], 4294966784 }
0x153a   :  { %3805 = vsyncpa [#allocation3], 1 }
0x153b   :  { %3806 = vsyncpa [#allocation4], 1 }

</bundles_post_ra>
